<compile_context>
chip_gen: v5e
topology: v5e:2x2
jax: 0.10.0
libtpu: 0.0.40
codegen_flags: <defaults>
</compile_context>

<pallas_src>
import jax
import jax.numpy as jnp
from jax.experimental import pallas as pl
from jax.experimental.pallas import tpu as pltpu

# ----------------------------- configuration --------------------------------
B, C, H, W = 2, 3, 16, 16      # input images (NCHW)
P = 8                          # patch size (ViT-S/8)
D = 32                         # embedding dim (384 in the real model)
NH = 4                         # attention heads
HD = D // NH                   # head dim
MLP = 4 * D                    # MLP hidden dim
DEPTH = 2                      # transformer depth (12 in the real model)
EPS = 1e-6                     # LayerNorm eps (timm/DINO default)
GH, GW = H // P, W // P
NP = GH * GW                   # number of patches
S = NP + 1                     # sequence length (+ cls token)
PD = C * P * P                 # flattened patch dim


# ------------------------------ kernel helpers -------------------------------
def _layernorm(x, g, b):
    mu = jnp.mean(x, axis=-1, keepdims=True)
    var = jnp.mean(jnp.square(x - mu), axis=-1, keepdims=True)
    return (x - mu) * jax.lax.rsqrt(var + EPS) * g + b


def _gelu(x):
    # TODO(synk): PyTorch nn.GELU() uses the exact erf form; tanh approximation
    # used here since erf has no guaranteed Mosaic lowering (~1e-3 deviation).
    c = jnp.float32(0.7978845608028654)  # sqrt(2/pi)
    return 0.5 * x * (1.0 + jnp.tanh(c * (x + 0.044715 * x * x * x)))


# ------------------------------ fused kernel ---------------------------------
def dino_fused_kernel(patches_ref, pw_ref, pb_ref, cls_ref, pos_ref,
                      ln1_g, ln1_b, wqkv, bqkv, wproj, bproj,
                      ln2_g, ln2_b, w1, b1, w2, b2, ng_ref, nb_ref,
                      o_ref, x_scr):
    # One full DINO forward for a single batch element, everything in VMEM.

    # --- patch embed (Conv2d as matmul) + cls token + positional embedding ---
    tok = jnp.dot(patches_ref[0].astype(jnp.bfloat16), pw_ref[...],
                  preferred_element_type=jnp.float32) + pb_ref[...]       # (NP, D)
    # Assemble tokens directly in an (S, D) VMEM scratch (no concat relayout).
    x_scr[0:1, :] = cls_ref[...] + pos_ref[0:1, :]
    x_scr[1:, :] = tok + pos_ref[1:, :]
    x = x_scr[...]                                                        # (S, D) f32

    scale = jnp.float32(HD ** -0.5)

    for l in range(DEPTH):      # unrolled: weights stay resident, no HBM trips
        # --- multi-head self-attention --------------------------------------
        h = _layernorm(x, ln1_g[l], ln1_b[l])                             # (S, D) f32
        # Single fused QKV matmul: (S, D) @ (D, 3D), 96/128 output lanes used.
        qkv = jnp.dot(h.astype(jnp.bfloat16), wqkv[l],
                      preferred_element_type=jnp.float32) + bqkv[l]       # (S, 3D)
        q = qkv[:, 0:D] * scale
        k = qkv[:, D:2 * D]
        v = qkv[:, 2 * D:3 * D]

        heads = []
        for hh in range(NH):
            lo, hi = hh * HD, (hh + 1) * HD
            qh = q[:, lo:hi].astype(jnp.bfloat16)                         # (S, HD)
            kh = k[:, lo:hi].astype(jnp.bfloat16)
            vh = v[:, lo:hi].astype(jnp.bfloat16)
            s = jax.lax.dot_general(qh, kh, (((1,), (1,)), ((), ())),
                                    preferred_element_type=jnp.float32)   # (S, S)
            s = s - jnp.max(s, axis=-1, keepdims=True)
            p = jnp.exp(s)
            p = p * pl.reciprocal(jnp.sum(p, axis=-1, keepdims=True),
                                  approx=True)
            heads.append(jax.lax.dot_general(p.astype(jnp.bfloat16), vh,
                                             (((1,), (0,)), ((), ())),
                                             preferred_element_type=jnp.float32))
        att = jnp.concatenate(heads, axis=-1)                             # (S, D)
        # Single output projection against the un-split wproj.
        x = x + jnp.dot(att.astype(jnp.bfloat16), wproj[l],
                        preferred_element_type=jnp.float32) + bproj[l]

        # --- MLP -------------------------------------------------------------
        h2 = _layernorm(x, ln2_g[l], ln2_b[l])
        h2 = jnp.dot(h2.astype(jnp.bfloat16), w1[l],
                     preferred_element_type=jnp.float32) + b1[l]
        h2 = _gelu(h2)
        h2 = jnp.dot(h2.astype(jnp.bfloat16), w2[l],
                     preferred_element_type=jnp.float32) + b2[l]
        x = x + h2

    # --- final LayerNorm on cls token + F.normalize(dim=-1, eps=1e-12) -------
    cls_out = x[0:1, :]                                                   # (1, D)
    xn = _layernorm(cls_out, ng_ref[...], nb_ref[...])
    nrm2 = jnp.sum(xn * xn, axis=-1, keepdims=True)
    # rsqrt lowers to the EUP; max() reproduces F.normalize's eps clamp.
    o_ref[0] = xn * jax.lax.rsqrt(jnp.maximum(nrm2, jnp.float32(1e-24)))


# ------------------------------- parameters ----------------------------------
def init_params(key):
    keys = jax.random.split(key, 3 + DEPTH)

    def nrm(k, shape, scale=0.02):
        return (scale * jax.random.normal(k, shape, jnp.float32)).astype(jnp.float32)

    params = {
        "patch_w": nrm(keys[0], (PD, D)),                     # Conv2d as matmul
        "patch_b": jnp.zeros((1, D), jnp.float32),
        "cls": nrm(keys[1], (1, 1, D)),
        "pos": nrm(keys[2], (1, S, D)),
        "norm_g": jnp.ones((1, D), jnp.float32),
        "norm_b": jnp.zeros((1, D), jnp.float32),
        "blocks": [],
    }
    for i in range(DEPTH):
        bk = jax.random.split(keys[3 + i], 4)
        params["blocks"].append(dict(
            ln1_g=jnp.ones((1, D), jnp.float32),
            ln1_b=jnp.zeros((1, D), jnp.float32),
            wqkv=nrm(bk[0], (D, 3 * D)),
            bqkv=jnp.zeros((1, 3 * D), jnp.float32),
            wproj=nrm(bk[1], (D, D)),
            bproj=jnp.zeros((1, D), jnp.float32),
            ln2_g=jnp.ones((1, D), jnp.float32),
            ln2_b=jnp.zeros((1, D), jnp.float32),
            w1=nrm(bk[2], (D, MLP)),
            b1=jnp.zeros((1, MLP), jnp.float32),
            w2=nrm(bk[3], (MLP, D)),
            b2=jnp.zeros((1, D), jnp.float32),
        ))
    return params


def prepare_fused_params(params):
    """Stack per-layer weights along DEPTH; matmul weights in bf16 (single MXU
    pass per matmul, half the resident VMEM), biases / LN params in f32."""
    blocks = params["blocks"]
    bf16 = jnp.bfloat16

    def stack(fn, dtype=jnp.float32):
        return jnp.stack([fn(b) for b in blocks], axis=0).astype(dtype)

    return [
        params["patch_w"].astype(bf16),                               # (PD, D)
        params["patch_b"],                                            # (1, D)
        params["cls"].reshape(1, D),                                  # (1, D)
        params["pos"].reshape(S, D),                                  # (S, D)
        stack(lambda b: b["ln1_g"]),                                  # (DEPTH, 1, D)
        stack(lambda b: b["ln1_b"]),
        stack(lambda b: b["wqkv"], bf16),                             # (DEPTH, D, 3D)
        stack(lambda b: b["bqkv"]),                                   # (DEPTH, 1, 3D)
        stack(lambda b: b["wproj"], bf16),                            # (DEPTH, D, D)
        stack(lambda b: b["bproj"]),                                  # (DEPTH, 1, D)
        stack(lambda b: b["ln2_g"]),
        stack(lambda b: b["ln2_b"]),
        stack(lambda b: b["w1"], bf16),                               # (DEPTH, D, MLP)
        stack(lambda b: b["b1"]),                                     # (DEPTH, 1, MLP)
        stack(lambda b: b["w2"], bf16),                               # (DEPTH, MLP, D)
        stack(lambda b: b["b2"]),                                     # (DEPTH, 1, D)
        params["norm_g"],                                             # (1, D)
        params["norm_b"],                                             # (1, D)
    ]


def _const_spec(a):
    """Full-array block, same block for every grid step (stays resident)."""
    # TODO(synk): at scaled-up configs mark these pipeline_mode=pl.Buffered(1)
    # so constants are not double-buffered.
    zeros = (0,) * a.ndim
    return pl.BlockSpec(a.shape, lambda i, _z=zeros: _z)


# --------------------------------- forward ------------------------------------
@jax.jit
def dino_forward(x, params):
    # Patchify NCHW -> (B, NP, C*P*P); each patch flattened as (C, ph, pw),
    # identical to Conv2d(C, D, kernel=P, stride=P) with weight reshaped (D, C*P*P).
    xb = x.reshape(B, C, GH, P, GW, P)
    xb = jnp.transpose(xb, (0, 2, 4, 1, 3, 5)).reshape(B, NP, PD)

    consts = prepare_fused_params(params)

    out = pl.pallas_call(
        dino_fused_kernel,
        out_shape=jax.ShapeDtypeStruct((B, 1, D), jnp.float32),
        grid=(B,),
        in_specs=[pl.BlockSpec((1, NP, PD), lambda i: (i, 0, 0))]
                 + [_const_spec(a) for a in consts],
        out_specs=pl.BlockSpec((1, 1, D), lambda i: (i, 0, 0)),
        scratch_shapes=[pltpu.VMEM((S, D), jnp.float32)],
        compiler_params=pltpu.CompilerParams(
            dimension_semantics=("parallel",)),
    )(xb, *consts)
    return out.reshape(B, D)


if __name__ == "__main__":
    key = jax.random.PRNGKey(0)
    pkey, xkey = jax.random.split(key)
    params = init_params(pkey)
    x = jax.random.normal(xkey, (B, C, H, W), jnp.float32)

    out = dino_forward(x, params)
    out = jax.block_until_ready(out)

    assert out.shape == (B, D) and out.dtype == jnp.float32
    # rows are L2-normalized
    assert bool(jnp.allclose(jnp.linalg.norm(out, axis=-1), 1.0, atol=1e-5))
    print("KERNEL_OK")
</pallas_src>

<mosaic_0001>
module attributes {stable_mosaic.version = 11 : i64} {
  func.func @dino_fused_kernel(%arg0: i32, %arg1: memref<1x4x192xf32, #tpu.memory_space<vmem>>, %arg2: memref<192x32xbf16, #tpu.memory_space<vmem>>, %arg3: memref<1x32xf32, #tpu.memory_space<vmem>>, %arg4: memref<1x32xf32, #tpu.memory_space<vmem>>, %arg5: memref<5x32xf32, #tpu.memory_space<vmem>>, %arg6: memref<2x1x32xf32, #tpu.memory_space<vmem>>, %arg7: memref<2x1x32xf32, #tpu.memory_space<vmem>>, %arg8: memref<2x32x96xbf16, #tpu.memory_space<vmem>>, %arg9: memref<2x1x96xf32, #tpu.memory_space<vmem>>, %arg10: memref<2x32x32xbf16, #tpu.memory_space<vmem>>, %arg11: memref<2x1x32xf32, #tpu.memory_space<vmem>>, %arg12: memref<2x1x32xf32, #tpu.memory_space<vmem>>, %arg13: memref<2x1x32xf32, #tpu.memory_space<vmem>>, %arg14: memref<2x32x128xbf16, #tpu.memory_space<vmem>>, %arg15: memref<2x1x128xf32, #tpu.memory_space<vmem>>, %arg16: memref<2x128x32xbf16, #tpu.memory_space<vmem>>, %arg17: memref<2x1x32xf32, #tpu.memory_space<vmem>>, %arg18: memref<1x32xf32, #tpu.memory_space<vmem>>, %arg19: memref<1x32xf32, #tpu.memory_space<vmem>>, %arg20: memref<1x1x32xf32, #tpu.memory_space<vmem>>, %arg21: memref<5x32xf32, #tpu.memory_space<vmem>>) attributes {dimension_semantics = [#tpu.dimension_semantics<parallel>], iteration_bounds = array<i64: 2>, scalar_prefetch = 0 : i64, scratch_operands = 1 : i64, tpu.core_type = #tpu.core_type<tc>, window_params = [{transform_indices = @transform_0, window_bounds = array<i64: 1, 4, 192>}, {pipeline_mode = #tpu.pipeline_mode<synchronous>, transform_indices = @transform_1, window_bounds = array<i64: 192, 32>}, {pipeline_mode = #tpu.pipeline_mode<synchronous>, transform_indices = @transform_2, window_bounds = array<i64: 1, 32>}, {pipeline_mode = #tpu.pipeline_mode<synchronous>, transform_indices = @transform_3, window_bounds = array<i64: 1, 32>}, {pipeline_mode = #tpu.pipeline_mode<synchronous>, transform_indices = @transform_4, window_bounds = array<i64: 5, 32>}, {pipeline_mode = #tpu.pipeline_mode<synchronous>, transform_indices = @transform_5, window_bounds = array<i64: 2, 1, 32>}, {pipeline_mode = #tpu.pipeline_mode<synchronous>, transform_indices = @transform_6, window_bounds = array<i64: 2, 1, 32>}, {pipeline_mode = #tpu.pipeline_mode<synchronous>, transform_indices = @transform_7, window_bounds = array<i64: 2, 32, 96>}, {pipeline_mode = #tpu.pipeline_mode<synchronous>, transform_indices = @transform_8, window_bounds = array<i64: 2, 1, 96>}, {pipeline_mode = #tpu.pipeline_mode<synchronous>, transform_indices = @transform_9, window_bounds = array<i64: 2, 32, 32>}, {pipeline_mode = #tpu.pipeline_mode<synchronous>, transform_indices = @transform_10, window_bounds = array<i64: 2, 1, 32>}, {pipeline_mode = #tpu.pipeline_mode<synchronous>, transform_indices = @transform_11, window_bounds = array<i64: 2, 1, 32>}, {pipeline_mode = #tpu.pipeline_mode<synchronous>, transform_indices = @transform_12, window_bounds = array<i64: 2, 1, 32>}, {pipeline_mode = #tpu.pipeline_mode<synchronous>, transform_indices = @transform_13, window_bounds = array<i64: 2, 32, 128>}, {pipeline_mode = #tpu.pipeline_mode<synchronous>, transform_indices = @transform_14, window_bounds = array<i64: 2, 1, 128>}, {pipeline_mode = #tpu.pipeline_mode<synchronous>, transform_indices = @transform_15, window_bounds = array<i64: 2, 128, 32>}, {pipeline_mode = #tpu.pipeline_mode<synchronous>, transform_indices = @transform_16, window_bounds = array<i64: 2, 1, 32>}, {pipeline_mode = #tpu.pipeline_mode<synchronous>, transform_indices = @transform_17, window_bounds = array<i64: 1, 32>}, {pipeline_mode = #tpu.pipeline_mode<synchronous>, transform_indices = @transform_18, window_bounds = array<i64: 1, 32>}, {transform_indices = @transform_19, window_bounds = array<i64: 1, 1, 32>}]} {
    %c0 = arith.constant 0 : index
    %c0_0 = arith.constant 0 : index
    %c0_1 = arith.constant 0 : index
    %0 = vector.load %arg1[%c0, %c0_0, %c0_1] : memref<1x4x192xf32, #tpu.memory_space<vmem>>, vector<1x4x192xf32>
    %1 = vector.shape_cast %0 : vector<1x4x192xf32> to vector<4x192xf32>
    %2 = arith.truncf %1 : vector<4x192xf32> to vector<4x192xbf16>
    %c0_2 = arith.constant 0 : index
    %c0_3 = arith.constant 0 : index
    %3 = vector.load %arg2[%c0_2, %c0_3] : memref<192x32xbf16, #tpu.memory_space<vmem>>, vector<192x32xbf16>
    %cst = arith.constant dense<0.000000e+00> : vector<4x32xf32>
    %4 = tpu.matmul %2, %3, %cst {dimension_numbers = #tpu.dot_dimension_numbers<[1], [0], [0], [1], [0, 0, 1, 1], [], []>} : vector<4x192xbf16>, vector<192x32xbf16>, vector<4x32xf32> -> vector<4x32xf32>
    %c0_4 = arith.constant 0 : index
    %c0_5 = arith.constant 0 : index
    %5 = vector.load %arg3[%c0_4, %c0_5] : memref<1x32xf32, #tpu.memory_space<vmem>>, vector<1x32xf32>
    %6 = vector.broadcast %5 : vector<1x32xf32> to vector<4x32xf32>
    %7 = arith.addf %4, %6 : vector<4x32xf32>
    %c0_6 = arith.constant 0 : index
    %c0_7 = arith.constant 0 : index
    %8 = vector.load %arg4[%c0_6, %c0_7] : memref<1x32xf32, #tpu.memory_space<vmem>>, vector<1x32xf32>
    %c0_8 = arith.constant 0 : index
    %c0_9 = arith.constant 0 : index
    %9 = vector.load %arg5[%c0_8, %c0_9] : memref<5x32xf32, #tpu.memory_space<vmem>>, vector<1x32xf32>
    %10 = arith.addf %8, %9 : vector<1x32xf32>
    %c0_10 = arith.constant 0 : index
    %c0_11 = arith.constant 0 : index
    %11 = vector.load %arg21[%c0_10, %c0_11] : memref<5x32xf32, #tpu.memory_space<vmem>>, vector<1x32xf32>
    tpu.vector_store %arg21[%c0_10, %c0_11], %10 {strides = array<i32>} : memref<5x32xf32, #tpu.memory_space<vmem>>, vector<1x32xf32>,
    %c1 = arith.constant 1 : index
    %c0_12 = arith.constant 0 : index
    %12 = vector.load %arg5[%c1, %c0_12] : memref<5x32xf32, #tpu.memory_space<vmem>>, vector<4x32xf32>
    %13 = arith.addf %7, %12 : vector<4x32xf32>
    %c1_13 = arith.constant 1 : index
    %c0_14 = arith.constant 0 : index
    %14 = vector.load %arg21[%c1_13, %c0_14] : memref<5x32xf32, #tpu.memory_space<vmem>>, vector<4x32xf32>
    tpu.vector_store %arg21[%c1_13, %c0_14], %13 {strides = array<i32>} : memref<5x32xf32, #tpu.memory_space<vmem>>, vector<4x32xf32>,
    %c0_15 = arith.constant 0 : index
    %c0_16 = arith.constant 0 : index
    %15 = vector.load %arg21[%c0_15, %c0_16] : memref<5x32xf32, #tpu.memory_space<vmem>>, vector<5x32xf32>
    %c0_17 = arith.constant 0 : index
    %c0_18 = arith.constant 0 : index
    %c0_19 = arith.constant 0 : index
    %16 = vector.load %arg6[%c0_17, %c0_18, %c0_19] : memref<2x1x32xf32, #tpu.memory_space<vmem>>, vector<1x1x32xf32>
    %17 = vector.shape_cast %16 : vector<1x1x32xf32> to vector<1x32xf32>
    %c0_20 = arith.constant 0 : index
    %c0_21 = arith.constant 0 : index
    %c0_22 = arith.constant 0 : index
    %18 = vector.load %arg7[%c0_20, %c0_21, %c0_22] : memref<2x1x32xf32, #tpu.memory_space<vmem>>, vector<1x1x32xf32>
    %19 = vector.shape_cast %18 : vector<1x1x32xf32> to vector<1x32xf32>
    %cst_23 = arith.constant dense<0.000000e+00> : vector<5xf32>
    %20 = vector.multi_reduction <add>, %15, %cst_23 [1] : vector<5x32xf32> to vector<5xf32>
    %21 = vector.shape_cast %20 : vector<5xf32> to vector<5x1xf32>
    %cst_24 = arith.constant 3.200000e+01 : f32
    %22 = vector.broadcast %cst_24 : f32 to vector<5x1xf32>
    %23 = arith.divf %21, %22 : vector<5x1xf32>
    %24 = vector.broadcast %23 : vector<5x1xf32> to vector<5x32xf32>
    %25 = arith.subf %15, %24 : vector<5x32xf32>
    %26 = arith.mulf %25, %25 : vector<5x32xf32>
    %cst_25 = arith.constant dense<0.000000e+00> : vector<5xf32>
    %27 = vector.multi_reduction <add>, %26, %cst_25 [1] : vector<5x32xf32> to vector<5xf32>
    %28 = vector.shape_cast %27 : vector<5xf32> to vector<5x1xf32>
    %cst_26 = arith.constant 3.200000e+01 : f32
    %29 = vector.broadcast %cst_26 : f32 to vector<5x1xf32>
    %30 = arith.divf %28, %29 : vector<5x1xf32>
    %31 = vector.broadcast %23 : vector<5x1xf32> to vector<5x32xf32>
    %32 = arith.subf %15, %31 : vector<5x32xf32>
    %cst_27 = arith.constant 9.99999997E-7 : f32
    %33 = vector.broadcast %cst_27 : f32 to vector<5x1xf32>
    %34 = arith.addf %30, %33 : vector<5x1xf32>
    %35 = math.rsqrt %34 : vector<5x1xf32>
    %36 = vector.broadcast %35 : vector<5x1xf32> to vector<5x32xf32>
    %37 = arith.mulf %32, %36 : vector<5x32xf32>
    %38 = vector.broadcast %17 : vector<1x32xf32> to vector<5x32xf32>
    %39 = arith.mulf %37, %38 : vector<5x32xf32>
    %40 = vector.broadcast %19 : vector<1x32xf32> to vector<5x32xf32>
    %41 = arith.addf %39, %40 : vector<5x32xf32>
    %42 = arith.truncf %41 : vector<5x32xf32> to vector<5x32xbf16>
    %c0_28 = arith.constant 0 : index
    %c0_29 = arith.constant 0 : index
    %c0_30 = arith.constant 0 : index
    %43 = vector.load %arg8[%c0_28, %c0_29, %c0_30] : memref<2x32x96xbf16, #tpu.memory_space<vmem>>, vector<1x32x96xbf16>
    %44 = vector.shape_cast %43 : vector<1x32x96xbf16> to vector<32x96xbf16>
    %cst_31 = arith.constant dense<0.000000e+00> : vector<5x96xf32>
    %45 = tpu.matmul %42, %44, %cst_31 {dimension_numbers = #tpu.dot_dimension_numbers<[1], [0], [0], [1], [0, 0, 1, 1], [], []>} : vector<5x32xbf16>, vector<32x96xbf16>, vector<5x96xf32> -> vector<5x96xf32>
    %c0_32 = arith.constant 0 : index
    %c0_33 = arith.constant 0 : index
    %c0_34 = arith.constant 0 : index
    %46 = vector.load %arg9[%c0_32, %c0_33, %c0_34] : memref<2x1x96xf32, #tpu.memory_space<vmem>>, vector<1x1x96xf32>
    %47 = vector.shape_cast %46 : vector<1x1x96xf32> to vector<1x96xf32>
    %48 = vector.broadcast %47 : vector<1x96xf32> to vector<5x96xf32>
    %49 = arith.addf %45, %48 : vector<5x96xf32>
    %50 = vector.extract_strided_slice %49 {offsets = [0, 0], sizes = [5, 32], strides = [1, 1]} : vector<5x96xf32> to vector<5x32xf32>
    %cst_35 = arith.constant 0.353553385 : f32
    %51 = vector.broadcast %cst_35 : f32 to vector<5x32xf32>
    %52 = arith.mulf %50, %51 : vector<5x32xf32>
    %53 = vector.extract_strided_slice %49 {offsets = [0, 32], sizes = [5, 32], strides = [1, 1]} : vector<5x96xf32> to vector<5x32xf32>
    %54 = vector.extract_strided_slice %49 {offsets = [0, 64], sizes = [5, 32], strides = [1, 1]} : vector<5x96xf32> to vector<5x32xf32>
    %55 = vector.extract_strided_slice %52 {offsets = [0, 0], sizes = [5, 8], strides = [1, 1]} : vector<5x32xf32> to vector<5x8xf32>
    %56 = arith.truncf %55 : vector<5x8xf32> to vector<5x8xbf16>
    %57 = vector.extract_strided_slice %53 {offsets = [0, 0], sizes = [5, 8], strides = [1, 1]} : vector<5x32xf32> to vector<5x8xf32>
    %58 = arith.truncf %57 : vector<5x8xf32> to vector<5x8xbf16>
    %59 = vector.extract_strided_slice %54 {offsets = [0, 0], sizes = [5, 8], strides = [1, 1]} : vector<5x32xf32> to vector<5x8xf32>
    %60 = arith.truncf %59 : vector<5x8xf32> to vector<5x8xbf16>
    %cst_36 = arith.constant dense<0.000000e+00> : vector<5x5xf32>
    %61 = tpu.matmul %56, %58, %cst_36 {dimension_numbers = #tpu.dot_dimension_numbers<[1], [1], [0], [0], [0, 0, 1, 0], [], []>} : vector<5x8xbf16>, vector<5x8xbf16>, vector<5x5xf32> -> vector<5x5xf32>
    %cst_37 = arith.constant dense<0xFF800000> : vector<5xf32>
    %62 = vector.multi_reduction <maximumf>, %61, %cst_37 [1] : vector<5x5xf32> to vector<5xf32>
    %63 = vector.shape_cast %62 : vector<5xf32> to vector<5x1xf32>
    %64 = vector.broadcast %63 : vector<5x1xf32> to vector<5x5xf32>
    %65 = arith.subf %61, %64 : vector<5x5xf32>
    %66 = math.exp %65 : vector<5x5xf32>
    %cst_38 = arith.constant dense<0.000000e+00> : vector<5xf32>
    %67 = vector.multi_reduction <add>, %66, %cst_38 [1] : vector<5x5xf32> to vector<5xf32>
    %68 = vector.shape_cast %67 : vector<5xf32> to vector<5x1xf32>
    %69 = tpu.reciprocal %68 {approx = true} : vector<5x1xf32> -> vector<5x1xf32>
    %70 = vector.broadcast %69 : vector<5x1xf32> to vector<5x5xf32>
    %71 = arith.mulf %66, %70 : vector<5x5xf32>
    %72 = arith.truncf %71 : vector<5x5xf32> to vector<5x5xbf16>
    %cst_39 = arith.constant dense<0.000000e+00> : vector<5x8xf32>
    %73 = tpu.matmul %72, %60, %cst_39 {dimension_numbers = #tpu.dot_dimension_numbers<[1], [0], [0], [1], [0, 0, 1, 1], [], []>} : vector<5x5xbf16>, vector<5x8xbf16>, vector<5x8xf32> -> vector<5x8xf32>
    %74 = vector.extract_strided_slice %52 {offsets = [0, 8], sizes = [5, 8], strides = [1, 1]} : vector<5x32xf32> to vector<5x8xf32>
    %75 = arith.truncf %74 : vector<5x8xf32> to vector<5x8xbf16>
    %76 = vector.extract_strided_slice %53 {offsets = [0, 8], sizes = [5, 8], strides = [1, 1]} : vector<5x32xf32> to vector<5x8xf32>
    %77 = arith.truncf %76 : vector<5x8xf32> to vector<5x8xbf16>
    %78 = vector.extract_strided_slice %54 {offsets = [0, 8], sizes = [5, 8], strides = [1, 1]} : vector<5x32xf32> to vector<5x8xf32>
    %79 = arith.truncf %78 : vector<5x8xf32> to vector<5x8xbf16>
    %cst_40 = arith.constant dense<0.000000e+00> : vector<5x5xf32>
    %80 = tpu.matmul %75, %77, %cst_40 {dimension_numbers = #tpu.dot_dimension_numbers<[1], [1], [0], [0], [0, 0, 1, 0], [], []>} : vector<5x8xbf16>, vector<5x8xbf16>, vector<5x5xf32> -> vector<5x5xf32>
    %cst_41 = arith.constant dense<0xFF800000> : vector<5xf32>
    %81 = vector.multi_reduction <maximumf>, %80, %cst_41 [1] : vector<5x5xf32> to vector<5xf32>
    %82 = vector.shape_cast %81 : vector<5xf32> to vector<5x1xf32>
    %83 = vector.broadcast %82 : vector<5x1xf32> to vector<5x5xf32>
    %84 = arith.subf %80, %83 : vector<5x5xf32>
    %85 = math.exp %84 : vector<5x5xf32>
    %cst_42 = arith.constant dense<0.000000e+00> : vector<5xf32>
    %86 = vector.multi_reduction <add>, %85, %cst_42 [1] : vector<5x5xf32> to vector<5xf32>
    %87 = vector.shape_cast %86 : vector<5xf32> to vector<5x1xf32>
    %88 = tpu.reciprocal %87 {approx = true} : vector<5x1xf32> -> vector<5x1xf32>
    %89 = vector.broadcast %88 : vector<5x1xf32> to vector<5x5xf32>
    %90 = arith.mulf %85, %89 : vector<5x5xf32>
    %91 = arith.truncf %90 : vector<5x5xf32> to vector<5x5xbf16>
    %cst_43 = arith.constant dense<0.000000e+00> : vector<5x8xf32>
    %92 = tpu.matmul %91, %79, %cst_43 {dimension_numbers = #tpu.dot_dimension_numbers<[1], [0], [0], [1], [0, 0, 1, 1], [], []>} : vector<5x5xbf16>, vector<5x8xbf16>, vector<5x8xf32> -> vector<5x8xf32>
    %93 = vector.extract_strided_slice %52 {offsets = [0, 16], sizes = [5, 8], strides = [1, 1]} : vector<5x32xf32> to vector<5x8xf32>
    %94 = arith.truncf %93 : vector<5x8xf32> to vector<5x8xbf16>
    %95 = vector.extract_strided_slice %53 {offsets = [0, 16], sizes = [5, 8], strides = [1, 1]} : vector<5x32xf32> to vector<5x8xf32>
    %96 = arith.truncf %95 : vector<5x8xf32> to vector<5x8xbf16>
    %97 = vector.extract_strided_slice %54 {offsets = [0, 16], sizes = [5, 8], strides = [1, 1]} : vector<5x32xf32> to vector<5x8xf32>
    %98 = arith.truncf %97 : vector<5x8xf32> to vector<5x8xbf16>
    %cst_44 = arith.constant dense<0.000000e+00> : vector<5x5xf32>
    %99 = tpu.matmul %94, %96, %cst_44 {dimension_numbers = #tpu.dot_dimension_numbers<[1], [1], [0], [0], [0, 0, 1, 0], [], []>} : vector<5x8xbf16>, vector<5x8xbf16>, vector<5x5xf32> -> vector<5x5xf32>
    %cst_45 = arith.constant dense<0xFF800000> : vector<5xf32>
    %100 = vector.multi_reduction <maximumf>, %99, %cst_45 [1] : vector<5x5xf32> to vector<5xf32>
    %101 = vector.shape_cast %100 : vector<5xf32> to vector<5x1xf32>
    %102 = vector.broadcast %101 : vector<5x1xf32> to vector<5x5xf32>
    %103 = arith.subf %99, %102 : vector<5x5xf32>
    %104 = math.exp %103 : vector<5x5xf32>
    %cst_46 = arith.constant dense<0.000000e+00> : vector<5xf32>
    %105 = vector.multi_reduction <add>, %104, %cst_46 [1] : vector<5x5xf32> to vector<5xf32>
    %106 = vector.shape_cast %105 : vector<5xf32> to vector<5x1xf32>
    %107 = tpu.reciprocal %106 {approx = true} : vector<5x1xf32> -> vector<5x1xf32>
    %108 = vector.broadcast %107 : vector<5x1xf32> to vector<5x5xf32>
    %109 = arith.mulf %104, %108 : vector<5x5xf32>
    %110 = arith.truncf %109 : vector<5x5xf32> to vector<5x5xbf16>
    %cst_47 = arith.constant dense<0.000000e+00> : vector<5x8xf32>
    %111 = tpu.matmul %110, %98, %cst_47 {dimension_numbers = #tpu.dot_dimension_numbers<[1], [0], [0], [1], [0, 0, 1, 1], [], []>} : vector<5x5xbf16>, vector<5x8xbf16>, vector<5x8xf32> -> vector<5x8xf32>
    %112 = vector.extract_strided_slice %52 {offsets = [0, 24], sizes = [5, 8], strides = [1, 1]} : vector<5x32xf32> to vector<5x8xf32>
    %113 = arith.truncf %112 : vector<5x8xf32> to vector<5x8xbf16>
    %114 = vector.extract_strided_slice %53 {offsets = [0, 24], sizes = [5, 8], strides = [1, 1]} : vector<5x32xf32> to vector<5x8xf32>
    %115 = arith.truncf %114 : vector<5x8xf32> to vector<5x8xbf16>
    %116 = vector.extract_strided_slice %54 {offsets = [0, 24], sizes = [5, 8], strides = [1, 1]} : vector<5x32xf32> to vector<5x8xf32>
    %117 = arith.truncf %116 : vector<5x8xf32> to vector<5x8xbf16>
    %cst_48 = arith.constant dense<0.000000e+00> : vector<5x5xf32>
    %118 = tpu.matmul %113, %115, %cst_48 {dimension_numbers = #tpu.dot_dimension_numbers<[1], [1], [0], [0], [0, 0, 1, 0], [], []>} : vector<5x8xbf16>, vector<5x8xbf16>, vector<5x5xf32> -> vector<5x5xf32>
    %cst_49 = arith.constant dense<0xFF800000> : vector<5xf32>
    %119 = vector.multi_reduction <maximumf>, %118, %cst_49 [1] : vector<5x5xf32> to vector<5xf32>
    %120 = vector.shape_cast %119 : vector<5xf32> to vector<5x1xf32>
    %121 = vector.broadcast %120 : vector<5x1xf32> to vector<5x5xf32>
    %122 = arith.subf %118, %121 : vector<5x5xf32>
    %123 = math.exp %122 : vector<5x5xf32>
    %cst_50 = arith.constant dense<0.000000e+00> : vector<5xf32>
    %124 = vector.multi_reduction <add>, %123, %cst_50 [1] : vector<5x5xf32> to vector<5xf32>
    %125 = vector.shape_cast %124 : vector<5xf32> to vector<5x1xf32>
    %126 = tpu.reciprocal %125 {approx = true} : vector<5x1xf32> -> vector<5x1xf32>
    %127 = vector.broadcast %126 : vector<5x1xf32> to vector<5x5xf32>
    %128 = arith.mulf %123, %127 : vector<5x5xf32>
    %129 = arith.truncf %128 : vector<5x5xf32> to vector<5x5xbf16>
    %cst_51 = arith.constant dense<0.000000e+00> : vector<5x8xf32>
    %130 = tpu.matmul %129, %117, %cst_51 {dimension_numbers = #tpu.dot_dimension_numbers<[1], [0], [0], [1], [0, 0, 1, 1], [], []>} : vector<5x5xbf16>, vector<5x8xbf16>, vector<5x8xf32> -> vector<5x8xf32>
    %131 = tpu.concatenate %73, %92, %111, %130 in 1 : vector<5x8xf32>, vector<5x8xf32>, vector<5x8xf32>, vector<5x8xf32> -> vector<5x32xf32>
    %132 = arith.truncf %131 : vector<5x32xf32> to vector<5x32xbf16>
    %c0_52 = arith.constant 0 : index
    %c0_53 = arith.constant 0 : index
    %c0_54 = arith.constant 0 : index
    %133 = vector.load %arg10[%c0_52, %c0_53, %c0_54] : memref<2x32x32xbf16, #tpu.memory_space<vmem>>, vector<1x32x32xbf16>
    %134 = vector.shape_cast %133 : vector<1x32x32xbf16> to vector<32x32xbf16>
    %cst_55 = arith.constant dense<0.000000e+00> : vector<5x32xf32>
    %135 = tpu.matmul %132, %134, %cst_55 {dimension_numbers = #tpu.dot_dimension_numbers<[1], [0], [0], [1], [0, 0, 1, 1], [], []>} : vector<5x32xbf16>, vector<32x32xbf16>, vector<5x32xf32> -> vector<5x32xf32>
    %136 = arith.addf %15, %135 : vector<5x32xf32>
    %c0_56 = arith.constant 0 : index
    %c0_57 = arith.constant 0 : index
    %c0_58 = arith.constant 0 : index
    %137 = vector.load %arg11[%c0_56, %c0_57, %c0_58] : memref<2x1x32xf32, #tpu.memory_space<vmem>>, vector<1x1x32xf32>
    %138 = vector.shape_cast %137 : vector<1x1x32xf32> to vector<1x32xf32>
    %139 = vector.broadcast %138 : vector<1x32xf32> to vector<5x32xf32>
    %140 = arith.addf %136, %139 : vector<5x32xf32>
    %c0_59 = arith.constant 0 : index
    %c0_60 = arith.constant 0 : index
    %c0_61 = arith.constant 0 : index
    %141 = vector.load %arg12[%c0_59, %c0_60, %c0_61] : memref<2x1x32xf32, #tpu.memory_space<vmem>>, vector<1x1x32xf32>
    %142 = vector.shape_cast %141 : vector<1x1x32xf32> to vector<1x32xf32>
    %c0_62 = arith.constant 0 : index
    %c0_63 = arith.constant 0 : index
    %c0_64 = arith.constant 0 : index
    %143 = vector.load %arg13[%c0_62, %c0_63, %c0_64] : memref<2x1x32xf32, #tpu.memory_space<vmem>>, vector<1x1x32xf32>
    %144 = vector.shape_cast %143 : vector<1x1x32xf32> to vector<1x32xf32>
    %cst_65 = arith.constant dense<0.000000e+00> : vector<5xf32>
    %145 = vector.multi_reduction <add>, %140, %cst_65 [1] : vector<5x32xf32> to vector<5xf32>
    %146 = vector.shape_cast %145 : vector<5xf32> to vector<5x1xf32>
    %cst_66 = arith.constant 3.200000e+01 : f32
    %147 = vector.broadcast %cst_66 : f32 to vector<5x1xf32>
    %148 = arith.divf %146, %147 : vector<5x1xf32>
    %149 = vector.broadcast %148 : vector<5x1xf32> to vector<5x32xf32>
    %150 = arith.subf %140, %149 : vector<5x32xf32>
    %151 = arith.mulf %150, %150 : vector<5x32xf32>
    %cst_67 = arith.constant dense<0.000000e+00> : vector<5xf32>
    %152 = vector.multi_reduction <add>, %151, %cst_67 [1] : vector<5x32xf32> to vector<5xf32>
    %153 = vector.shape_cast %152 : vector<5xf32> to vector<5x1xf32>
    %cst_68 = arith.constant 3.200000e+01 : f32
    %154 = vector.broadcast %cst_68 : f32 to vector<5x1xf32>
    %155 = arith.divf %153, %154 : vector<5x1xf32>
    %156 = vector.broadcast %148 : vector<5x1xf32> to vector<5x32xf32>
    %157 = arith.subf %140, %156 : vector<5x32xf32>
    %cst_69 = arith.constant 9.99999997E-7 : f32
    %158 = vector.broadcast %cst_69 : f32 to vector<5x1xf32>
    %159 = arith.addf %155, %158 : vector<5x1xf32>
    %160 = math.rsqrt %159 : vector<5x1xf32>
    %161 = vector.broadcast %160 : vector<5x1xf32> to vector<5x32xf32>
    %162 = arith.mulf %157, %161 : vector<5x32xf32>
    %163 = vector.broadcast %142 : vector<1x32xf32> to vector<5x32xf32>
    %164 = arith.mulf %162, %163 : vector<5x32xf32>
    %165 = vector.broadcast %144 : vector<1x32xf32> to vector<5x32xf32>
    %166 = arith.addf %164, %165 : vector<5x32xf32>
    %167 = arith.truncf %166 : vector<5x32xf32> to vector<5x32xbf16>
    %c0_70 = arith.constant 0 : index
    %c0_71 = arith.constant 0 : index
    %c0_72 = arith.constant 0 : index
    %168 = vector.load %arg14[%c0_70, %c0_71, %c0_72] : memref<2x32x128xbf16, #tpu.memory_space<vmem>>, vector<1x32x128xbf16>
    %169 = vector.shape_cast %168 : vector<1x32x128xbf16> to vector<32x128xbf16>
    %cst_73 = arith.constant dense<0.000000e+00> : vector<5x128xf32>
    %170 = tpu.matmul %167, %169, %cst_73 {dimension_numbers = #tpu.dot_dimension_numbers<[1], [0], [0], [1], [0, 0, 1, 1], [], []>} : vector<5x32xbf16>, vector<32x128xbf16>, vector<5x128xf32> -> vector<5x128xf32>
    %c0_74 = arith.constant 0 : index
    %c0_75 = arith.constant 0 : index
    %c0_76 = arith.constant 0 : index
    %171 = vector.load %arg15[%c0_74, %c0_75, %c0_76] : memref<2x1x128xf32, #tpu.memory_space<vmem>>, vector<1x1x128xf32>
    %172 = vector.shape_cast %171 : vector<1x1x128xf32> to vector<1x128xf32>
    %173 = vector.broadcast %172 : vector<1x128xf32> to vector<5x128xf32>
    %174 = arith.addf %170, %173 : vector<5x128xf32>
    %cst_77 = arith.constant 5.000000e-01 : f32
    %175 = vector.broadcast %cst_77 : f32 to vector<5x128xf32>
    %176 = arith.mulf %175, %174 : vector<5x128xf32>
    %cst_78 = arith.constant 4.471500e-02 : f32
    %177 = vector.broadcast %cst_78 : f32 to vector<5x128xf32>
    %178 = arith.mulf %177, %174 : vector<5x128xf32>
    %179 = arith.mulf %178, %174 : vector<5x128xf32>
    %180 = arith.mulf %179, %174 : vector<5x128xf32>
    %181 = arith.addf %174, %180 : vector<5x128xf32>
    %cst_79 = arith.constant 0.797884583 : f32
    %182 = vector.broadcast %cst_79 : f32 to vector<5x128xf32>
    %183 = arith.mulf %182, %181 : vector<5x128xf32>
    %184 = math.tanh %183 : vector<5x128xf32>
    %cst_80 = arith.constant 1.000000e+00 : f32
    %185 = vector.broadcast %cst_80 : f32 to vector<5x128xf32>
    %186 = arith.addf %185, %184 : vector<5x128xf32>
    %187 = arith.mulf %176, %186 : vector<5x128xf32>
    %188 = arith.truncf %187 : vector<5x128xf32> to vector<5x128xbf16>
    %c0_81 = arith.constant 0 : index
    %c0_82 = arith.constant 0 : index
    %c0_83 = arith.constant 0 : index
    %189 = vector.load %arg16[%c0_81, %c0_82, %c0_83] : memref<2x128x32xbf16, #tpu.memory_space<vmem>>, vector<1x128x32xbf16>
    %190 = vector.shape_cast %189 : vector<1x128x32xbf16> to vector<128x32xbf16>
    %cst_84 = arith.constant dense<0.000000e+00> : vector<5x32xf32>
    %191 = tpu.matmul %188, %190, %cst_84 {dimension_numbers = #tpu.dot_dimension_numbers<[1], [0], [0], [1], [0, 0, 1, 1], [], []>} : vector<5x128xbf16>, vector<128x32xbf16>, vector<5x32xf32> -> vector<5x32xf32>
    %c0_85 = arith.constant 0 : index
    %c0_86 = arith.constant 0 : index
    %c0_87 = arith.constant 0 : index
    %192 = vector.load %arg17[%c0_85, %c0_86, %c0_87] : memref<2x1x32xf32, #tpu.memory_space<vmem>>, vector<1x1x32xf32>
    %193 = vector.shape_cast %192 : vector<1x1x32xf32> to vector<1x32xf32>
    %194 = vector.broadcast %193 : vector<1x32xf32> to vector<5x32xf32>
    %195 = arith.addf %191, %194 : vector<5x32xf32>
    %196 = arith.addf %140, %195 : vector<5x32xf32>
    %c1_88 = arith.constant 1 : index
    %c0_89 = arith.constant 0 : index
    %c0_90 = arith.constant 0 : index
    %197 = vector.load %arg6[%c1_88, %c0_89, %c0_90] : memref<2x1x32xf32, #tpu.memory_space<vmem>>, vector<1x1x32xf32>
    %198 = vector.shape_cast %197 : vector<1x1x32xf32> to vector<1x32xf32>
    %c1_91 = arith.constant 1 : index
    %c0_92 = arith.constant 0 : index
    %c0_93 = arith.constant 0 : index
    %199 = vector.load %arg7[%c1_91, %c0_92, %c0_93] : memref<2x1x32xf32, #tpu.memory_space<vmem>>, vector<1x1x32xf32>
    %200 = vector.shape_cast %199 : vector<1x1x32xf32> to vector<1x32xf32>
    %cst_94 = arith.constant dense<0.000000e+00> : vector<5xf32>
    %201 = vector.multi_reduction <add>, %196, %cst_94 [1] : vector<5x32xf32> to vector<5xf32>
    %202 = vector.shape_cast %201 : vector<5xf32> to vector<5x1xf32>
    %cst_95 = arith.constant 3.200000e+01 : f32
    %203 = vector.broadcast %cst_95 : f32 to vector<5x1xf32>
    %204 = arith.divf %202, %203 : vector<5x1xf32>
    %205 = vector.broadcast %204 : vector<5x1xf32> to vector<5x32xf32>
    %206 = arith.subf %196, %205 : vector<5x32xf32>
    %207 = arith.mulf %206, %206 : vector<5x32xf32>
    %cst_96 = arith.constant dense<0.000000e+00> : vector<5xf32>
    %208 = vector.multi_reduction <add>, %207, %cst_96 [1] : vector<5x32xf32> to vector<5xf32>
    %209 = vector.shape_cast %208 : vector<5xf32> to vector<5x1xf32>
    %cst_97 = arith.constant 3.200000e+01 : f32
    %210 = vector.broadcast %cst_97 : f32 to vector<5x1xf32>
    %211 = arith.divf %209, %210 : vector<5x1xf32>
    %212 = vector.broadcast %204 : vector<5x1xf32> to vector<5x32xf32>
    %213 = arith.subf %196, %212 : vector<5x32xf32>
    %cst_98 = arith.constant 9.99999997E-7 : f32
    %214 = vector.broadcast %cst_98 : f32 to vector<5x1xf32>
    %215 = arith.addf %211, %214 : vector<5x1xf32>
    %216 = math.rsqrt %215 : vector<5x1xf32>
    %217 = vector.broadcast %216 : vector<5x1xf32> to vector<5x32xf32>
    %218 = arith.mulf %213, %217 : vector<5x32xf32>
    %219 = vector.broadcast %198 : vector<1x32xf32> to vector<5x32xf32>
    %220 = arith.mulf %218, %219 : vector<5x32xf32>
    %221 = vector.broadcast %200 : vector<1x32xf32> to vector<5x32xf32>
    %222 = arith.addf %220, %221 : vector<5x32xf32>
    %223 = arith.truncf %222 : vector<5x32xf32> to vector<5x32xbf16>
    %c1_99 = arith.constant 1 : index
    %c0_100 = arith.constant 0 : index
    %c0_101 = arith.constant 0 : index
    %224 = vector.load %arg8[%c1_99, %c0_100, %c0_101] : memref<2x32x96xbf16, #tpu.memory_space<vmem>>, vector<1x32x96xbf16>
    %225 = vector.shape_cast %224 : vector<1x32x96xbf16> to vector<32x96xbf16>
    %cst_102 = arith.constant dense<0.000000e+00> : vector<5x96xf32>
    %226 = tpu.matmul %223, %225, %cst_102 {dimension_numbers = #tpu.dot_dimension_numbers<[1], [0], [0], [1], [0, 0, 1, 1], [], []>} : vector<5x32xbf16>, vector<32x96xbf16>, vector<5x96xf32> -> vector<5x96xf32>
    %c1_103 = arith.constant 1 : index
    %c0_104 = arith.constant 0 : index
    %c0_105 = arith.constant 0 : index
    %227 = vector.load %arg9[%c1_103, %c0_104, %c0_105] : memref<2x1x96xf32, #tpu.memory_space<vmem>>, vector<1x1x96xf32>
    %228 = vector.shape_cast %227 : vector<1x1x96xf32> to vector<1x96xf32>
    %229 = vector.broadcast %228 : vector<1x96xf32> to vector<5x96xf32>
    %230 = arith.addf %226, %229 : vector<5x96xf32>
    %231 = vector.extract_strided_slice %230 {offsets = [0, 0], sizes = [5, 32], strides = [1, 1]} : vector<5x96xf32> to vector<5x32xf32>
    %cst_106 = arith.constant 0.353553385 : f32
    %232 = vector.broadcast %cst_106 : f32 to vector<5x32xf32>
    %233 = arith.mulf %231, %232 : vector<5x32xf32>
    %234 = vector.extract_strided_slice %230 {offsets = [0, 32], sizes = [5, 32], strides = [1, 1]} : vector<5x96xf32> to vector<5x32xf32>
    %235 = vector.extract_strided_slice %230 {offsets = [0, 64], sizes = [5, 32], strides = [1, 1]} : vector<5x96xf32> to vector<5x32xf32>
    %236 = vector.extract_strided_slice %233 {offsets = [0, 0], sizes = [5, 8], strides = [1, 1]} : vector<5x32xf32> to vector<5x8xf32>
    %237 = arith.truncf %236 : vector<5x8xf32> to vector<5x8xbf16>
    %238 = vector.extract_strided_slice %234 {offsets = [0, 0], sizes = [5, 8], strides = [1, 1]} : vector<5x32xf32> to vector<5x8xf32>
    %239 = arith.truncf %238 : vector<5x8xf32> to vector<5x8xbf16>
    %240 = vector.extract_strided_slice %235 {offsets = [0, 0], sizes = [5, 8], strides = [1, 1]} : vector<5x32xf32> to vector<5x8xf32>
    %241 = arith.truncf %240 : vector<5x8xf32> to vector<5x8xbf16>
    %cst_107 = arith.constant dense<0.000000e+00> : vector<5x5xf32>
    %242 = tpu.matmul %237, %239, %cst_107 {dimension_numbers = #tpu.dot_dimension_numbers<[1], [1], [0], [0], [0, 0, 1, 0], [], []>} : vector<5x8xbf16>, vector<5x8xbf16>, vector<5x5xf32> -> vector<5x5xf32>
    %cst_108 = arith.constant dense<0xFF800000> : vector<5xf32>
    %243 = vector.multi_reduction <maximumf>, %242, %cst_108 [1] : vector<5x5xf32> to vector<5xf32>
    %244 = vector.shape_cast %243 : vector<5xf32> to vector<5x1xf32>
    %245 = vector.broadcast %244 : vector<5x1xf32> to vector<5x5xf32>
    %246 = arith.subf %242, %245 : vector<5x5xf32>
    %247 = math.exp %246 : vector<5x5xf32>
    %cst_109 = arith.constant dense<0.000000e+00> : vector<5xf32>
    %248 = vector.multi_reduction <add>, %247, %cst_109 [1] : vector<5x5xf32> to vector<5xf32>
    %249 = vector.shape_cast %248 : vector<5xf32> to vector<5x1xf32>
    %250 = tpu.reciprocal %249 {approx = true} : vector<5x1xf32> -> vector<5x1xf32>
    %251 = vector.broadcast %250 : vector<5x1xf32> to vector<5x5xf32>
    %252 = arith.mulf %247, %251 : vector<5x5xf32>
    %253 = arith.truncf %252 : vector<5x5xf32> to vector<5x5xbf16>
    %cst_110 = arith.constant dense<0.000000e+00> : vector<5x8xf32>
    %254 = tpu.matmul %253, %241, %cst_110 {dimension_numbers = #tpu.dot_dimension_numbers<[1], [0], [0], [1], [0, 0, 1, 1], [], []>} : vector<5x5xbf16>, vector<5x8xbf16>, vector<5x8xf32> -> vector<5x8xf32>
    %255 = vector.extract_strided_slice %233 {offsets = [0, 8], sizes = [5, 8], strides = [1, 1]} : vector<5x32xf32> to vector<5x8xf32>
    %256 = arith.truncf %255 : vector<5x8xf32> to vector<5x8xbf16>
    %257 = vector.extract_strided_slice %234 {offsets = [0, 8], sizes = [5, 8], strides = [1, 1]} : vector<5x32xf32> to vector<5x8xf32>
    %258 = arith.truncf %257 : vector<5x8xf32> to vector<5x8xbf16>
    %259 = vector.extract_strided_slice %235 {offsets = [0, 8], sizes = [5, 8], strides = [1, 1]} : vector<5x32xf32> to vector<5x8xf32>
    %260 = arith.truncf %259 : vector<5x8xf32> to vector<5x8xbf16>
    %cst_111 = arith.constant dense<0.000000e+00> : vector<5x5xf32>
    %261 = tpu.matmul %256, %258, %cst_111 {dimension_numbers = #tpu.dot_dimension_numbers<[1], [1], [0], [0], [0, 0, 1, 0], [], []>} : vector<5x8xbf16>, vector<5x8xbf16>, vector<5x5xf32> -> vector<5x5xf32>
    %cst_112 = arith.constant dense<0xFF800000> : vector<5xf32>
    %262 = vector.multi_reduction <maximumf>, %261, %cst_112 [1] : vector<5x5xf32> to vector<5xf32>
    %263 = vector.shape_cast %262 : vector<5xf32> to vector<5x1xf32>
    %264 = vector.broadcast %263 : vector<5x1xf32> to vector<5x5xf32>
    %265 = arith.subf %261, %264 : vector<5x5xf32>
    %266 = math.exp %265 : vector<5x5xf32>
    %cst_113 = arith.constant dense<0.000000e+00> : vector<5xf32>
    %267 = vector.multi_reduction <add>, %266, %cst_113 [1] : vector<5x5xf32> to vector<5xf32>
    %268 = vector.shape_cast %267 : vector<5xf32> to vector<5x1xf32>
    %269 = tpu.reciprocal %268 {approx = true} : vector<5x1xf32> -> vector<5x1xf32>
    %270 = vector.broadcast %269 : vector<5x1xf32> to vector<5x5xf32>
    %271 = arith.mulf %266, %270 : vector<5x5xf32>
    %272 = arith.truncf %271 : vector<5x5xf32> to vector<5x5xbf16>
    %cst_114 = arith.constant dense<0.000000e+00> : vector<5x8xf32>
    %273 = tpu.matmul %272, %260, %cst_114 {dimension_numbers = #tpu.dot_dimension_numbers<[1], [0], [0], [1], [0, 0, 1, 1], [], []>} : vector<5x5xbf16>, vector<5x8xbf16>, vector<5x8xf32> -> vector<5x8xf32>
    %274 = vector.extract_strided_slice %233 {offsets = [0, 16], sizes = [5, 8], strides = [1, 1]} : vector<5x32xf32> to vector<5x8xf32>
    %275 = arith.truncf %274 : vector<5x8xf32> to vector<5x8xbf16>
    %276 = vector.extract_strided_slice %234 {offsets = [0, 16], sizes = [5, 8], strides = [1, 1]} : vector<5x32xf32> to vector<5x8xf32>
    %277 = arith.truncf %276 : vector<5x8xf32> to vector<5x8xbf16>
    %278 = vector.extract_strided_slice %235 {offsets = [0, 16], sizes = [5, 8], strides = [1, 1]} : vector<5x32xf32> to vector<5x8xf32>
    %279 = arith.truncf %278 : vector<5x8xf32> to vector<5x8xbf16>
    %cst_115 = arith.constant dense<0.000000e+00> : vector<5x5xf32>
    %280 = tpu.matmul %275, %277, %cst_115 {dimension_numbers = #tpu.dot_dimension_numbers<[1], [1], [0], [0], [0, 0, 1, 0], [], []>} : vector<5x8xbf16>, vector<5x8xbf16>, vector<5x5xf32> -> vector<5x5xf32>
    %cst_116 = arith.constant dense<0xFF800000> : vector<5xf32>
    %281 = vector.multi_reduction <maximumf>, %280, %cst_116 [1] : vector<5x5xf32> to vector<5xf32>
    %282 = vector.shape_cast %281 : vector<5xf32> to vector<5x1xf32>
    %283 = vector.broadcast %282 : vector<5x1xf32> to vector<5x5xf32>
    %284 = arith.subf %280, %283 : vector<5x5xf32>
    %285 = math.exp %284 : vector<5x5xf32>
    %cst_117 = arith.constant dense<0.000000e+00> : vector<5xf32>
    %286 = vector.multi_reduction <add>, %285, %cst_117 [1] : vector<5x5xf32> to vector<5xf32>
    %287 = vector.shape_cast %286 : vector<5xf32> to vector<5x1xf32>
    %288 = tpu.reciprocal %287 {approx = true} : vector<5x1xf32> -> vector<5x1xf32>
    %289 = vector.broadcast %288 : vector<5x1xf32> to vector<5x5xf32>
    %290 = arith.mulf %285, %289 : vector<5x5xf32>
    %291 = arith.truncf %290 : vector<5x5xf32> to vector<5x5xbf16>
    %cst_118 = arith.constant dense<0.000000e+00> : vector<5x8xf32>
    %292 = tpu.matmul %291, %279, %cst_118 {dimension_numbers = #tpu.dot_dimension_numbers<[1], [0], [0], [1], [0, 0, 1, 1], [], []>} : vector<5x5xbf16>, vector<5x8xbf16>, vector<5x8xf32> -> vector<5x8xf32>
    %293 = vector.extract_strided_slice %233 {offsets = [0, 24], sizes = [5, 8], strides = [1, 1]} : vector<5x32xf32> to vector<5x8xf32>
    %294 = arith.truncf %293 : vector<5x8xf32> to vector<5x8xbf16>
    %295 = vector.extract_strided_slice %234 {offsets = [0, 24], sizes = [5, 8], strides = [1, 1]} : vector<5x32xf32> to vector<5x8xf32>
    %296 = arith.truncf %295 : vector<5x8xf32> to vector<5x8xbf16>
    %297 = vector.extract_strided_slice %235 {offsets = [0, 24], sizes = [5, 8], strides = [1, 1]} : vector<5x32xf32> to vector<5x8xf32>
    %298 = arith.truncf %297 : vector<5x8xf32> to vector<5x8xbf16>
    %cst_119 = arith.constant dense<0.000000e+00> : vector<5x5xf32>
    %299 = tpu.matmul %294, %296, %cst_119 {dimension_numbers = #tpu.dot_dimension_numbers<[1], [1], [0], [0], [0, 0, 1, 0], [], []>} : vector<5x8xbf16>, vector<5x8xbf16>, vector<5x5xf32> -> vector<5x5xf32>
    %cst_120 = arith.constant dense<0xFF800000> : vector<5xf32>
    %300 = vector.multi_reduction <maximumf>, %299, %cst_120 [1] : vector<5x5xf32> to vector<5xf32>
    %301 = vector.shape_cast %300 : vector<5xf32> to vector<5x1xf32>
    %302 = vector.broadcast %301 : vector<5x1xf32> to vector<5x5xf32>
    %303 = arith.subf %299, %302 : vector<5x5xf32>
    %304 = math.exp %303 : vector<5x5xf32>
    %cst_121 = arith.constant dense<0.000000e+00> : vector<5xf32>
    %305 = vector.multi_reduction <add>, %304, %cst_121 [1] : vector<5x5xf32> to vector<5xf32>
    %306 = vector.shape_cast %305 : vector<5xf32> to vector<5x1xf32>
    %307 = tpu.reciprocal %306 {approx = true} : vector<5x1xf32> -> vector<5x1xf32>
    %308 = vector.broadcast %307 : vector<5x1xf32> to vector<5x5xf32>
    %309 = arith.mulf %304, %308 : vector<5x5xf32>
    %310 = arith.truncf %309 : vector<5x5xf32> to vector<5x5xbf16>
    %cst_122 = arith.constant dense<0.000000e+00> : vector<5x8xf32>
    %311 = tpu.matmul %310, %298, %cst_122 {dimension_numbers = #tpu.dot_dimension_numbers<[1], [0], [0], [1], [0, 0, 1, 1], [], []>} : vector<5x5xbf16>, vector<5x8xbf16>, vector<5x8xf32> -> vector<5x8xf32>
    %312 = tpu.concatenate %254, %273, %292, %311 in 1 : vector<5x8xf32>, vector<5x8xf32>, vector<5x8xf32>, vector<5x8xf32> -> vector<5x32xf32>
    %313 = arith.truncf %312 : vector<5x32xf32> to vector<5x32xbf16>
    %c1_123 = arith.constant 1 : index
    %c0_124 = arith.constant 0 : index
    %c0_125 = arith.constant 0 : index
    %314 = vector.load %arg10[%c1_123, %c0_124, %c0_125] : memref<2x32x32xbf16, #tpu.memory_space<vmem>>, vector<1x32x32xbf16>
    %315 = vector.shape_cast %314 : vector<1x32x32xbf16> to vector<32x32xbf16>
    %cst_126 = arith.constant dense<0.000000e+00> : vector<5x32xf32>
    %316 = tpu.matmul %313, %315, %cst_126 {dimension_numbers = #tpu.dot_dimension_numbers<[1], [0], [0], [1], [0, 0, 1, 1], [], []>} : vector<5x32xbf16>, vector<32x32xbf16>, vector<5x32xf32> -> vector<5x32xf32>
    %317 = arith.addf %196, %316 : vector<5x32xf32>
    %c1_127 = arith.constant 1 : index
    %c0_128 = arith.constant 0 : index
    %c0_129 = arith.constant 0 : index
    %318 = vector.load %arg11[%c1_127, %c0_128, %c0_129] : memref<2x1x32xf32, #tpu.memory_space<vmem>>, vector<1x1x32xf32>
    %319 = vector.shape_cast %318 : vector<1x1x32xf32> to vector<1x32xf32>
    %320 = vector.broadcast %319 : vector<1x32xf32> to vector<5x32xf32>
    %321 = arith.addf %317, %320 : vector<5x32xf32>
    %c1_130 = arith.constant 1 : index
    %c0_131 = arith.constant 0 : index
    %c0_132 = arith.constant 0 : index
    %322 = vector.load %arg12[%c1_130, %c0_131, %c0_132] : memref<2x1x32xf32, #tpu.memory_space<vmem>>, vector<1x1x32xf32>
    %323 = vector.shape_cast %322 : vector<1x1x32xf32> to vector<1x32xf32>
    %c1_133 = arith.constant 1 : index
    %c0_134 = arith.constant 0 : index
    %c0_135 = arith.constant 0 : index
    %324 = vector.load %arg13[%c1_133, %c0_134, %c0_135] : memref<2x1x32xf32, #tpu.memory_space<vmem>>, vector<1x1x32xf32>
    %325 = vector.shape_cast %324 : vector<1x1x32xf32> to vector<1x32xf32>
    %cst_136 = arith.constant dense<0.000000e+00> : vector<5xf32>
    %326 = vector.multi_reduction <add>, %321, %cst_136 [1] : vector<5x32xf32> to vector<5xf32>
    %327 = vector.shape_cast %326 : vector<5xf32> to vector<5x1xf32>
    %cst_137 = arith.constant 3.200000e+01 : f32
    %328 = vector.broadcast %cst_137 : f32 to vector<5x1xf32>
    %329 = arith.divf %327, %328 : vector<5x1xf32>
    %330 = vector.broadcast %329 : vector<5x1xf32> to vector<5x32xf32>
    %331 = arith.subf %321, %330 : vector<5x32xf32>
    %332 = arith.mulf %331, %331 : vector<5x32xf32>
    %cst_138 = arith.constant dense<0.000000e+00> : vector<5xf32>
    %333 = vector.multi_reduction <add>, %332, %cst_138 [1] : vector<5x32xf32> to vector<5xf32>
    %334 = vector.shape_cast %333 : vector<5xf32> to vector<5x1xf32>
    %cst_139 = arith.constant 3.200000e+01 : f32
    %335 = vector.broadcast %cst_139 : f32 to vector<5x1xf32>
    %336 = arith.divf %334, %335 : vector<5x1xf32>
    %337 = vector.broadcast %329 : vector<5x1xf32> to vector<5x32xf32>
    %338 = arith.subf %321, %337 : vector<5x32xf32>
    %cst_140 = arith.constant 9.99999997E-7 : f32
    %339 = vector.broadcast %cst_140 : f32 to vector<5x1xf32>
    %340 = arith.addf %336, %339 : vector<5x1xf32>
    %341 = math.rsqrt %340 : vector<5x1xf32>
    %342 = vector.broadcast %341 : vector<5x1xf32> to vector<5x32xf32>
    %343 = arith.mulf %338, %342 : vector<5x32xf32>
    %344 = vector.broadcast %323 : vector<1x32xf32> to vector<5x32xf32>
    %345 = arith.mulf %343, %344 : vector<5x32xf32>
    %346 = vector.broadcast %325 : vector<1x32xf32> to vector<5x32xf32>
    %347 = arith.addf %345, %346 : vector<5x32xf32>
    %348 = arith.truncf %347 : vector<5x32xf32> to vector<5x32xbf16>
    %c1_141 = arith.constant 1 : index
    %c0_142 = arith.constant 0 : index
    %c0_143 = arith.constant 0 : index
    %349 = vector.load %arg14[%c1_141, %c0_142, %c0_143] : memref<2x32x128xbf16, #tpu.memory_space<vmem>>, vector<1x32x128xbf16>
    %350 = vector.shape_cast %349 : vector<1x32x128xbf16> to vector<32x128xbf16>
    %cst_144 = arith.constant dense<0.000000e+00> : vector<5x128xf32>
    %351 = tpu.matmul %348, %350, %cst_144 {dimension_numbers = #tpu.dot_dimension_numbers<[1], [0], [0], [1], [0, 0, 1, 1], [], []>} : vector<5x32xbf16>, vector<32x128xbf16>, vector<5x128xf32> -> vector<5x128xf32>
    %c1_145 = arith.constant 1 : index
    %c0_146 = arith.constant 0 : index
    %c0_147 = arith.constant 0 : index
    %352 = vector.load %arg15[%c1_145, %c0_146, %c0_147] : memref<2x1x128xf32, #tpu.memory_space<vmem>>, vector<1x1x128xf32>
    %353 = vector.shape_cast %352 : vector<1x1x128xf32> to vector<1x128xf32>
    %354 = vector.broadcast %353 : vector<1x128xf32> to vector<5x128xf32>
    %355 = arith.addf %351, %354 : vector<5x128xf32>
    %cst_148 = arith.constant 5.000000e-01 : f32
    %356 = vector.broadcast %cst_148 : f32 to vector<5x128xf32>
    %357 = arith.mulf %356, %355 : vector<5x128xf32>
    %cst_149 = arith.constant 4.471500e-02 : f32
    %358 = vector.broadcast %cst_149 : f32 to vector<5x128xf32>
    %359 = arith.mulf %358, %355 : vector<5x128xf32>
    %360 = arith.mulf %359, %355 : vector<5x128xf32>
    %361 = arith.mulf %360, %355 : vector<5x128xf32>
    %362 = arith.addf %355, %361 : vector<5x128xf32>
    %cst_150 = arith.constant 0.797884583 : f32
    %363 = vector.broadcast %cst_150 : f32 to vector<5x128xf32>
    %364 = arith.mulf %363, %362 : vector<5x128xf32>
    %365 = math.tanh %364 : vector<5x128xf32>
    %cst_151 = arith.constant 1.000000e+00 : f32
    %366 = vector.broadcast %cst_151 : f32 to vector<5x128xf32>
    %367 = arith.addf %366, %365 : vector<5x128xf32>
    %368 = arith.mulf %357, %367 : vector<5x128xf32>
    %369 = arith.truncf %368 : vector<5x128xf32> to vector<5x128xbf16>
    %c1_152 = arith.constant 1 : index
    %c0_153 = arith.constant 0 : index
    %c0_154 = arith.constant 0 : index
    %370 = vector.load %arg16[%c1_152, %c0_153, %c0_154] : memref<2x128x32xbf16, #tpu.memory_space<vmem>>, vector<1x128x32xbf16>
    %371 = vector.shape_cast %370 : vector<1x128x32xbf16> to vector<128x32xbf16>
    %cst_155 = arith.constant dense<0.000000e+00> : vector<5x32xf32>
    %372 = tpu.matmul %369, %371, %cst_155 {dimension_numbers = #tpu.dot_dimension_numbers<[1], [0], [0], [1], [0, 0, 1, 1], [], []>} : vector<5x128xbf16>, vector<128x32xbf16>, vector<5x32xf32> -> vector<5x32xf32>
    %c1_156 = arith.constant 1 : index
    %c0_157 = arith.constant 0 : index
    %c0_158 = arith.constant 0 : index
    %373 = vector.load %arg17[%c1_156, %c0_157, %c0_158] : memref<2x1x32xf32, #tpu.memory_space<vmem>>, vector<1x1x32xf32>
    %374 = vector.shape_cast %373 : vector<1x1x32xf32> to vector<1x32xf32>
    %375 = vector.broadcast %374 : vector<1x32xf32> to vector<5x32xf32>
    %376 = arith.addf %372, %375 : vector<5x32xf32>
    %377 = arith.addf %321, %376 : vector<5x32xf32>
    %378 = vector.extract_strided_slice %377 {offsets = [0, 0], sizes = [1, 32], strides = [1, 1]} : vector<5x32xf32> to vector<1x32xf32>
    %c0_159 = arith.constant 0 : index
    %c0_160 = arith.constant 0 : index
    %379 = vector.load %arg18[%c0_159, %c0_160] : memref<1x32xf32, #tpu.memory_space<vmem>>, vector<1x32xf32>
    %c0_161 = arith.constant 0 : index
    %c0_162 = arith.constant 0 : index
    %380 = vector.load %arg19[%c0_161, %c0_162] : memref<1x32xf32, #tpu.memory_space<vmem>>, vector<1x32xf32>
    %cst_163 = arith.constant dense<0.000000e+00> : vector<1xf32>
    %381 = vector.multi_reduction <add>, %378, %cst_163 [1] : vector<1x32xf32> to vector<1xf32>
    %382 = vector.shape_cast %381 : vector<1xf32> to vector<1x1xf32>
    %cst_164 = arith.constant 3.200000e+01 : f32
    %383 = vector.broadcast %cst_164 : f32 to vector<1x1xf32>
    %384 = arith.divf %382, %383 : vector<1x1xf32>
    %385 = vector.broadcast %384 : vector<1x1xf32> to vector<1x32xf32>
    %386 = arith.subf %378, %385 : vector<1x32xf32>
    %387 = arith.mulf %386, %386 : vector<1x32xf32>
    %cst_165 = arith.constant dense<0.000000e+00> : vector<1xf32>
    %388 = vector.multi_reduction <add>, %387, %cst_165 [1] : vector<1x32xf32> to vector<1xf32>
    %389 = vector.shape_cast %388 : vector<1xf32> to vector<1x1xf32>
    %cst_166 = arith.constant 3.200000e+01 : f32
    %390 = vector.broadcast %cst_166 : f32 to vector<1x1xf32>
    %391 = arith.divf %389, %390 : vector<1x1xf32>
    %392 = vector.broadcast %384 : vector<1x1xf32> to vector<1x32xf32>
    %393 = arith.subf %378, %392 : vector<1x32xf32>
    %cst_167 = arith.constant 9.99999997E-7 : f32
    %394 = vector.broadcast %cst_167 : f32 to vector<1x1xf32>
    %395 = arith.addf %391, %394 : vector<1x1xf32>
    %396 = math.rsqrt %395 : vector<1x1xf32>
    %397 = vector.broadcast %396 : vector<1x1xf32> to vector<1x32xf32>
    %398 = arith.mulf %393, %397 : vector<1x32xf32>
    %399 = arith.mulf %398, %379 : vector<1x32xf32>
    %400 = arith.addf %399, %380 : vector<1x32xf32>
    %401 = arith.mulf %400, %400 : vector<1x32xf32>
    %cst_168 = arith.constant dense<0.000000e+00> : vector<1xf32>
    %402 = vector.multi_reduction <add>, %401, %cst_168 [1] : vector<1x32xf32> to vector<1xf32>
    %403 = vector.shape_cast %402 : vector<1xf32> to vector<1x1xf32>
    %cst_169 = arith.constant 1.000000e-24 : f32
    %404 = vector.broadcast %cst_169 : f32 to vector<1x1xf32>
    %405 = arith.maximumf %403, %404 : vector<1x1xf32>
    %406 = math.rsqrt %405 : vector<1x1xf32>
    %407 = vector.broadcast %406 : vector<1x1xf32> to vector<1x32xf32>
    %408 = arith.mulf %400, %407 : vector<1x32xf32>
    %c0_170 = arith.constant 0 : index
    %c0_171 = arith.constant 0 : index
    %c0_172 = arith.constant 0 : index
    %409 = vector.load %arg20[%c0_170, %c0_171, %c0_172] : memref<1x1x32xf32, #tpu.memory_space<vmem>>, vector<1x1x32xf32>
    %410 = vector.shape_cast %409 : vector<1x1x32xf32> to vector<1x32xf32>
    %411 = vector.shape_cast %408 : vector<1x32xf32> to vector<1x1x32xf32>
    tpu.vector_store %arg20[%c0_170, %c0_171, %c0_172], %411 {strides = array<i32>} : memref<1x1x32xf32, #tpu.memory_space<vmem>>, vector<1x1x32xf32>,
    return
  }
  func.func @transform_0(%arg0: i32) -> (i32, i32, i32) {
    %c0_i32 = arith.constant 0 : i32
    %c0_i32_0 = arith.constant 0 : i32
    %c0_i32_1 = arith.constant 0 : i32
    return %arg0, %c0_i32, %c0_i32_0 : i32, i32, i32
  }
  func.func @transform_1(%arg0: i32) -> (i32, i32) {
    %c0_i32 = arith.constant 0 : i32
    %c0_i32_0 = arith.constant 0 : i32
    %c0_i32_1 = arith.constant 0 : i32
    return %c0_i32, %c0_i32_0 : i32, i32
  }
  func.func @transform_2(%arg0: i32) -> (i32, i32) {
    %c0_i32 = arith.constant 0 : i32
    %c0_i32_0 = arith.constant 0 : i32
    %c0_i32_1 = arith.constant 0 : i32
    return %c0_i32, %c0_i32_0 : i32, i32
  }
  func.func @transform_3(%arg0: i32) -> (i32, i32) {
    %c0_i32 = arith.constant 0 : i32
    %c0_i32_0 = arith.constant 0 : i32
    %c0_i32_1 = arith.constant 0 : i32
    return %c0_i32, %c0_i32_0 : i32, i32
  }
  func.func @transform_4(%arg0: i32) -> (i32, i32) {
    %c0_i32 = arith.constant 0 : i32
    %c0_i32_0 = arith.constant 0 : i32
    %c0_i32_1 = arith.constant 0 : i32
    return %c0_i32, %c0_i32_0 : i32, i32
  }
  func.func @transform_5(%arg0: i32) -> (i32, i32, i32) {
    %c0_i32 = arith.constant 0 : i32
    %c0_i32_0 = arith.constant 0 : i32
    %c0_i32_1 = arith.constant 0 : i32
    %c0_i32_2 = arith.constant 0 : i32
    return %c0_i32, %c0_i32_0, %c0_i32_1 : i32, i32, i32
  }
  func.func @transform_6(%arg0: i32) -> (i32, i32, i32) {
    %c0_i32 = arith.constant 0 : i32
    %c0_i32_0 = arith.constant 0 : i32
    %c0_i32_1 = arith.constant 0 : i32
    %c0_i32_2 = arith.constant 0 : i32
    return %c0_i32, %c0_i32_0, %c0_i32_1 : i32, i32, i32
  }
  func.func @transform_7(%arg0: i32) -> (i32, i32, i32) {
    %c0_i32 = arith.constant 0 : i32
    %c0_i32_0 = arith.constant 0 : i32
    %c0_i32_1 = arith.constant 0 : i32
    %c0_i32_2 = arith.constant 0 : i32
    return %c0_i32, %c0_i32_0, %c0_i32_1 : i32, i32, i32
  }
  func.func @transform_8(%arg0: i32) -> (i32, i32, i32) {
    %c0_i32 = arith.constant 0 : i32
    %c0_i32_0 = arith.constant 0 : i32
    %c0_i32_1 = arith.constant 0 : i32
    %c0_i32_2 = arith.constant 0 : i32
    return %c0_i32, %c0_i32_0, %c0_i32_1 : i32, i32, i32
  }
  func.func @transform_9(%arg0: i32) -> (i32, i32, i32) {
    %c0_i32 = arith.constant 0 : i32
    %c0_i32_0 = arith.constant 0 : i32
    %c0_i32_1 = arith.constant 0 : i32
    %c0_i32_2 = arith.constant 0 : i32
    return %c0_i32, %c0_i32_0, %c0_i32_1 : i32, i32, i32
  }
  func.func @transform_10(%arg0: i32) -> (i32, i32, i32) {
    %c0_i32 = arith.constant 0 : i32
    %c0_i32_0 = arith.constant 0 : i32
    %c0_i32_1 = arith.constant 0 : i32
    %c0_i32_2 = arith.constant 0 : i32
    return %c0_i32, %c0_i32_0, %c0_i32_1 : i32, i32, i32
  }
  func.func @transform_11(%arg0: i32) -> (i32, i32, i32) {
    %c0_i32 = arith.constant 0 : i32
    %c0_i32_0 = arith.constant 0 : i32
    %c0_i32_1 = arith.constant 0 : i32
    %c0_i32_2 = arith.constant 0 : i32
    return %c0_i32, %c0_i32_0, %c0_i32_1 : i32, i32, i32
  }
  func.func @transform_12(%arg0: i32) -> (i32, i32, i32) {
    %c0_i32 = arith.constant 0 : i32
    %c0_i32_0 = arith.constant 0 : i32
    %c0_i32_1 = arith.constant 0 : i32
    %c0_i32_2 = arith.constant 0 : i32
    return %c0_i32, %c0_i32_0, %c0_i32_1 : i32, i32, i32
  }
  func.func @transform_13(%arg0: i32) -> (i32, i32, i32) {
    %c0_i32 = arith.constant 0 : i32
    %c0_i32_0 = arith.constant 0 : i32
    %c0_i32_1 = arith.constant 0 : i32
    %c0_i32_2 = arith.constant 0 : i32
    return %c0_i32, %c0_i32_0, %c0_i32_1 : i32, i32, i32
  }
  func.func @transform_14(%arg0: i32) -> (i32, i32, i32) {
    %c0_i32 = arith.constant 0 : i32
    %c0_i32_0 = arith.constant 0 : i32
    %c0_i32_1 = arith.constant 0 : i32
    %c0_i32_2 = arith.constant 0 : i32
    return %c0_i32, %c0_i32_0, %c0_i32_1 : i32, i32, i32
  }
  func.func @transform_15(%arg0: i32) -> (i32, i32, i32) {
    %c0_i32 = arith.constant 0 : i32
    %c0_i32_0 = arith.constant 0 : i32
    %c0_i32_1 = arith.constant 0 : i32
    %c0_i32_2 = arith.constant 0 : i32
    return %c0_i32, %c0_i32_0, %c0_i32_1 : i32, i32, i32
  }
  func.func @transform_16(%arg0: i32) -> (i32, i32, i32) {
    %c0_i32 = arith.constant 0 : i32
    %c0_i32_0 = arith.constant 0 : i32
    %c0_i32_1 = arith.constant 0 : i32
    %c0_i32_2 = arith.constant 0 : i32
    return %c0_i32, %c0_i32_0, %c0_i32_1 : i32, i32, i32
  }
  func.func @transform_17(%arg0: i32) -> (i32, i32) {
    %c0_i32 = arith.constant 0 : i32
    %c0_i32_0 = arith.constant 0 : i32
    %c0_i32_1 = arith.constant 0 : i32
    return %c0_i32, %c0_i32_0 : i32, i32
  }
  func.func @transform_18(%arg0: i32) -> (i32, i32) {
    %c0_i32 = arith.constant 0 : i32
    %c0_i32_0 = arith.constant 0 : i32
    %c0_i32_1 = arith.constant 0 : i32
    return %c0_i32, %c0_i32_0 : i32, i32
  }
  func.func @transform_19(%arg0: i32) -> (i32, i32, i32) {
    %c0_i32 = arith.constant 0 : i32
    %c0_i32_0 = arith.constant 0 : i32
    %c0_i32_1 = arith.constant 0 : i32
    return %arg0, %c0_i32, %c0_i32_0 : i32, i32, i32
  }
}

</mosaic_0001>

<bundles_post_ra>
// kernel: dino_forward.1
= control target key start
LH: loop header
LB: loop body
LE: loop exit
PB: predicated region body
PF: predicated region fallthrough
CT: control target
= control target key end

     0   :  { %s2918_s0 = inlined_call_operand.vmem [shape: f32[2,4,192], index: 0, kind: input, shape index: {}]   ;;  %s2919_s1 = inlined_call_operand.vmem [shape: bf16[192,32], index: 1, kind: input, shape index: {}]   ;;  %s2920_s2 = inlined_call_operand.vmem [shape: f32[1,32], index: 2, kind: input, shape index: {}]   ;;  %s2921_s3 = inlined_call_operand.vmem [shape: f32[1,32], index: 3, kind: input, shape index: {}]   ;;  %s2922_s4 = inlined_call_operand.vmem [shape: f32[5,32], index: 4, kind: input, shape index: {}]   ;;  %s2923_s5 = inlined_call_operand.vmem [shape: f32[2,1,32], index: 5, kind: input, shape index: {}]   ;;  %s2924_s6 = inlined_call_operand.vmem [shape: f32[2,1,32], index: 6, kind: input, shape index: {}]   ;;  %s2925_s7 = inlined_call_operand.vmem [shape: bf16[2,32,96], index: 7, kind: input, shape index: {}]   ;;  %s2926_s8 = inlined_call_operand.vmem [shape: f32[2,1,96], index: 8, kind: input, shape index: {}]   ;;  %s2927_s9 = inlined_call_operand.vmem [shape: bf16[2,32,32], index: 9, kind: input, shape index: {}]   ;;  %s2928_s10 = inlined_call_operand.vmem [shape: f32[2,1,32], index: 10, kind: input, shape index: {}]   ;;  %s2929_s11 = inlined_call_operand.vmem [shape: f32[2,1,32], index: 11, kind: input, shape index: {}]   ;;  %s2930_s12 = inlined_call_operand.vmem [shape: f32[2,1,32], index: 12, kind: input, shape index: {}]   ;;  %s2931_s13 = inlined_call_operand.vmem [shape: bf16[2,32,128], index: 13, kind: input, shape index: {}]   ;;  %s2932_s14 = inlined_call_operand.vmem [shape: f32[2,1,128], index: 14, kind: input, shape index: {}]   ;;  %s2933_s15 = inlined_call_operand.vmem [shape: bf16[2,128,32], index: 15, kind: input, shape index: {}]   ;;  %s2934_s16 = inlined_call_operand.vmem [shape: f32[2,1,32], index: 16, kind: input, shape index: {}]   ;;  %s2935_s17 = inlined_call_operand.vmem [shape: f32[1,32], index: 17, kind: input, shape index: {}]   ;;  %s2936_s18 = inlined_call_operand.vmem [shape: f32[1,32], index: 18, kind: input, shape index: {}]   ;;  %s2937_s19 = inlined_call_operand.hbm [shape: f32[2,1,32], index: 19, kind: output, shape index: {}]  }
   0x1   :  { %2959 = sst [smem:[#allocation13_spill]] %s2918_s0 }
   0x2   :  { %2960 = sst [smem:[#allocation14_spill]] %s2919_s1 }
   0x3   :  { %2961 = sst [smem:[#allocation15_spill]] %s2920_s2 }
   0x4   :  { %2962 = sst [smem:[#allocation16_spill]] %s2921_s3 }
   0x5   :  { %2963 = sst [smem:[#allocation17_spill]] %s2922_s4 }
   0x6   :  { %2964 = sst [smem:[#allocation18_spill]] %s2923_s5 }
   0x7   :  { %2965 = sst [smem:[#allocation19_spill]] %s2937_s19 }
   0x8   :  { %24 = vsyncpa [#allocation4], 0 }
   0x9   :  { %26 = vsyncpa [#allocation4 + $0x1], 0  ;;  %s2483_s0 = smov 0   ;;  %s2485_s30 = smov 0  }
   0xa   :  { %s2487_s20 = smov 0   ;;  %s2489_s21 = smov 0  }
   0xb LB: > { %2966 = sst [smem:[#allocation6_spill]] %s2353_s0  ;;  %s2504_s1 = sadd.s32 4294967295, %s2365_s21   ;;  %s2365_s21 = sphi %s2489_s21, %s2997_s21   ;;  %s2361_s20 = sphi %s2487_s20, %s2999_s20   ;;  %s2357_s30 = sphi %s2485_s30, %s3001_s30   ;;  %s2353_s0 = sphi %s2483_s0, %s3000_s0  }
   0xc   : > { %2967 = sst [smem:[#allocation7_spill]] %s2361_s20  ;;  %s1913_s22 = sadd.s32 4294967294, %s2365_s21  }
   0xd   : > { %2968 = sst [smem:[#allocation8_spill]] %s2365_s21  ;;  %s2508_s2 = sadd.s32 1, %s2365_s21  }
   0xe   : > { %2969 = sst [smem:[#allocation9_spill]] %s2508_s2  ;;  %s443_s23 = sadd.s32 1, %s2361_s20 }
   0xf   : > { %s440_s24 = ssub.s32 %s2365_s21, %s2508_s2  ;;  %p453_p0 = scmp.ne.s32.totalorder %s2361_s20, %s2357_s30 }
  0x10   : > { %p441_p1 = scmp.eq.s32.totalorder %s440_s24, 0  ;;  %p454_p2 = scmp.eq.s32.totalorder %s2504_s1, 1 }
  0x11   : > { %p459_p3 = scmp.ne.s32.totalorder %s2357_s30, %s2353_s0  ;;  %p460_p4 = scmp.eq.s32.totalorder %s1913_s22, 1 }
  0x12   : > { %s2519_s25 = scalar_select %p441_p1, %s2361_s20, %s443_s23  }
  0x13   : > { %p2521_p5 = por %p454_p2, %p453_p0  ;;  %p2525_p6 = por %p460_p4, %p459_p3 }
  0x14   : > { %2970 = sst [smem:[#allocation10_spill]] %s2519_s25  ;;  %p1916_p7 = scmp.ge.s32.totalorder %s2365_s21, 1 }
  0x15   : > { %s2971_s3 = scalar_select %p2521_p5, 1, 0 }
  0x16   : > { %s2973_s26 = scalar_select %p2525_p6, 1, 0 }
  0x17   : > { %2972 = sst [smem:[#allocation11_spill]] %s2971_s3  ;;  %p540_p8 = scmp.lt.s32.totalorder %s2365_s21, 3 }
  0x18   : > { %2974 = sst [smem:[#allocation12_spill]] %s2973_s26 }
  0x19   : > { %p541_p9 = pnand %p1916_p7, %p540_p8 }
  0x1a   : > { %s2975_s29 = sld [smem:[#allocation14_spill]] (!%p541_p9)  ;;  %p595_p10 = scmp.lt.s32.totalorder (!%p541_p9), %s2504_s1, 1 }
  0x1b   : > { %544 = sbr.rel (%p541_p9) target bundleno = 5132 (0x140c), region = 96  ;;  %s2976_s19 = sld [smem:[#allocation13_spill]] (!%p541_p9) }
  0x1c   : > { %s2977_s26 = sld [smem:[#allocation16_spill]] (!%p541_p9)  ;;  %s2370_s27 = smov (!%p541_p9), 88  }
  0x1d   : > { %s2978_s4 = sld [smem:[#allocation17_spill]] (!%p541_p9)  ;;  %s2952_s28 = smov (!%p541_p9), 56  }
  0x1e   : > { %s2980_s5 = sld [smem:[#allocation18_spill]] (!%p541_p9)  ;;  %s2955_s22 = smov (!%p541_p9), 112  }
  0x1f   : > { %s2951_s23 = smov (!%p541_p9), 64   ;;  %s2956_s2 = smov (!%p541_p9), 80  }
  0x20   : > { %v2148_v0 = vld [vmem:[%s2975_s29 + $0x38] sm:$0xff]  ;;  %v2147_v2 = vld [vmem:[%s2975_s29 + $0x30] sm:$0xff]  ;;  %s596_s20 = scalar_select %p595_p10, %s2504_s1, 1  ;;  %v2146_v4 = vld [vmem:[%s2975_s29 + $0x28] sm:$0xff]  ;;  %vm710_vm0 = vcmask 523264   ;;  %vm743_vm1 = vcmask 253952  }
  0x21   : > { %v2152_v1 = vld [vmem:[%s2975_s29 + $0x58] sm:$0xff]  ;;  %714 = vmatpush.bf16.msra.mxu0 %v2148_v0  ;;  %v2151_v3 = vld [vmem:[%s2975_s29 + $0x50] sm:$0xff]  ;;  %v2150_v5 = vld [vmem:[%s2975_s29 + $0x48] sm:$0xff]  ;;  %vm747_vm2 = vcmask 257024   ;;  %vm752_vm3 = vcmask 258048   ;;  %v2367_v31 = vmov 32.0  }
  0x22   : > { %731 = vmatpush.bf16.msra.mxu1 %v2152_v1  ;;  %s2140_s0 = sshll.u32 %s596_s20, 3  ;;  %v2145_v7 = vld [vmem:[%s2975_s29 + $0x20] sm:$0xff]  ;;  %v2144_v9 = vld [vmem:[%s2975_s29 + $0x18] sm:$0xff]  ;;  %v2143_v12 = vld [vmem:[%s2975_s29 + $0x10] sm:$0xff]  ;;  %2253 = vrcp.f32 %v2367_v31  ;;  %vm811_vm8 = vcmask 261120   ;;  %vm834_vm9 = vcmask 64512  }
  0x23   : > { %s599_s25 = scalar_lea.vmem %s2976_s19, %s2140_s0  ;;  %v2149_v8 = vld [vmem:[%s2975_s29 + $0x40] sm:$0xff]  ;;  %v2142_v13 = vld [vmem:[%s2975_s29 + $0x8] sm:$0xff]  ;;  %s2979_s19 = sld [smem:[#allocation15_spill]]  ;;  %vm854_vm10 = vcmask 36864   ;;  %vm873_vm11 = vcmask 1041408   ;;  %vm874_vm12 = vcmask 1042432  }
  0x24   : > { %v601_v6 = vld [vmem:[%s599_s25] sm:$0xff]  ;;  %v2154_v43 = vld [vmem:[%s2925_s7 + $0x8] sm:$0xff]  ;;  %s2958_s0 = smov 120   ;;  %s2374_s25 = smov 72   ;;  %vm869_vm13 = vcmask 39936   ;;  %vm1075_vm14 = vcmask 130048  }
  0x25   : > { %715 = vmatpush.bf16.msra.mxu0 %v2147_v2  ;;  %603 = vst [vmem:[#allocation1] ss:$2 sm:$0xff] %v601_v6  ;;  %v2141_v14 = vld [vmem:[%s2975_s29] sm:$0xff]  ;;  %821 = vmatpush.bf16.msra.mxu2 %v2154_v43  ;;  %s2950_s24 = smov 40   ;;  %s2948_s20 = smov 48   ;;  %vm1077_vm15 = vcmask 195584  }
  0x26   : > { %732 = vmatpush.bf16.msra.mxu1 %v2151_v3  ;;  %v740_v17 = vld [vmem:[%s2977_s26] sm:$0x1]  ;;  %v745_v25 = vld [vmem:[%s2978_s4 + $0x1] sm:$0xf]  ;;  %s2957_s26 = smov 104   ;;  %s2949_s21 = smov 8  }
  0x27   : > { %v741_v18 = vld [vmem:[%s2978_s4] sm:$0x1]  ;;  %s593_s3 = sand.u32 1, %s2357_s30  }
  0x28   : > { %v742_v19 = vadd.f32 %v741_v18, %v740_v17  ;;  %v2254_v32 = vpop.eup %2253  ;;  %v2153_v44 = vld [vmem:[%s2925_s7] sm:$0xff] }
  0x29   : > { %716 = vmatpush.bf16.msra.mxu0 %v2146_v4  ;;  %v2236_v22 = vld [vmem:[%s2979_s19] ss:$0 sm:$0xff]  ;;  %v757_v33 = vmul.f32 32.0, %v2254_v32  ;;  %vm761_vm4 = vweird.f32 %v2254_v32  ;;  %822 = vmatpush.bf16.msra.mxu2 %v2153_v44  ;;  %s2368_s19 = smov 96  }
  0x2a   : > { %733 = vmatpush.bf16.msra.mxu1 %v2150_v5  ;;  %744 = vst.msk [vmem:[#allocation2] sm:$0x1] %vm743_vm1, %v742_v19  ;;  %v2237_v54 = vld [vmem:[%s2980_s5] ss:$0 sm:$0xff] }
  0x2b   : > { %v758_v34 = vsub.f32 1.0, %v757_v33  ;;  %v2238_v57 = vld [vmem:[%s2924_s6] ss:$0 sm:$0xff] }
  0x2c   : > { %v605_v10 = vld.sshfl [vmem:[#allocation1 + $0x8] sm:$0xff pattern:$0x75316420]  ;;  %v604_v15 = vld.sshfl [vmem:[#allocation1] sm:$0xff pattern:$0x75316420] }
  0x2d   : > { %717 = vmatpush.bf16.msra.mxu0 %v2145_v7  ;;  %v609_v11 = vpack.c.bf16 %v605_v10, %v605_v10  ;;  %v608_v16 = vpack.c.bf16 %v604_v15, %v604_v15  ;;  %v759_v35 = vmul.f32 %v2254_v32, %v758_v34  ;;  %v2239_v61 = vld [vmem:[%s2926_s8] ss:$0 sm:$0xff] }
  0x2e   : > { %734 = vmatpush.bf16.msra.mxu1 %v2149_v8 }
  0x2f   : > { %v760_v36 = vadd.f32 %v2254_v32, %v759_v35 }
  0x31   : > { %718 = vmatpush.bf16.msra.mxu0 %v2144_v9  ;;  %1967 = vmatmul.msk.bf16.vlgmr.msra.gmra.mxu1 %vm710_vm0, %v609_v11  ;;  %v2589_v37 = vsel %vm761_vm4, %v2254_v32, %v760_v36 }
  0x35   : > { %719 = vmatpush.bf16.msra.mxu0 %v2143_v12 }
  0x39   : > { %720 = vmatpush.bf16.msra.mxu0 %v2142_v13 }
  0x3d   : > { %721 = vmatpush.bf16.msra.mxu0 %v2141_v14 }
  0x40   : > { %722 = vmatmul.bf16.vlgmr.msra.gmra.mxu0 %v608_v16 }
  0xae   : > { %v736_v20 = vpop.f32.mrf.mxu1 }
  0xb6   : > { %v738_v21 = vpop.f32.mrf.mxu1 }
  0xbd   : > { %v723_v23 = vpop.f32.mrf.mxu0 }
  0xbe   : > { %v724_v24 = vadd.f32 %v2236_v22, %v723_v23 }
  0xc0   : > { %v737_v26 = vadd.f32 %v736_v20, %v724_v24 }
  0xc2   : > { %v746_v27 = vadd.f32 %v745_v25, %v737_v26 }
  0xc4   : > { %748 = vst.msk [vmem:[#allocation2 + $0x1] sm:$0xf] %vm747_vm2, %v746_v27 }
  0xc5   : > { %v725_v28 = vpop.f32.mrf.mxu0 }
  0xcb   : > { %v2585_v29 = vld [vmem:[#allocation2] sm:$0x1f] }
  0xcc   : > { %v753_v30 = vsel %vm752_vm3, %v2585_v29, 0.0 }
  0xcd   : > { %754 = vadd.xlane.f32.xlu0 %v753_v30  ;;  %v2375_v30 = vmov 65535  }
  0xce   : > { %v875_v31 = vsel %vm873_vm11, 4294967295, %v2375_v30  ;;  %v2240_v30 = vld [vmem:[%s2928_s10] ss:$0 sm:$0xff] }
  0xcf   : > { %v2639_v32 = vsel %vm874_vm12, %v875_v31, 0 }
 0x140   : > { %v755_v38 = vpop.xlane.xlu0 %754 }
 0x141   : > { %v763_v39 = vmul.f32 %v2589_v37, %v755_v38 }
 0x143   : > { %v764_v40 = vsub.f32 %v2585_v29, %v763_v39 }
 0x145   : > { %v765_v41 = vmul.f32 %v764_v40, %v764_v40 }
 0x147   : > { %v766_v42 = vsel %vm752_vm3, %v765_v41, 0.0 }
 0x148   : > { %767 = vadd.xlane.f32.xlu0 %v766_v42 }
 0x1bb   : > { %v768_v45 = vpop.xlane.xlu0 %767 }
 0x1bc   : > { %v769_v46 = vmul.f32 %v768_v45, %v2589_v37 }
 0x1be   : > { %v770_v47 = vadd.f32 1e-06, %v769_v46 }
 0x1c0   : > { %2255 = vrsqrt.f32 %v770_v47  ;;  %vm777_vm6 = vweird.f32 %v770_v47 }
 0x1c6   : > { %v2256_v48 = vpop.eup %2255 }
 0x1c7   : > { %v772_v49 = vmul.f32 %v2256_v48, %v770_v47  ;;  %vm778_vm5 = vweird.f32 %v2256_v48 }
 0x1c8   : > { %vm779_vm7 = vmor %vm777_vm6, %vm778_vm5 }
 0x1c9   : > { %v773_v50 = vmul.f32 %v2256_v48, %v772_v49 }
 0x1cb   : > { %v774_v51 = vmul.f32 0.5, %v773_v50 }
 0x1cd   : > { %v775_v52 = vsub.f32 1.5, %v774_v51 }
 0x1cf   : > { %v776_v53 = vmul.f32 %v2256_v48, %v775_v52 }
 0x1d1   : > { %v780_v55 = vsel %vm779_vm7, %v2256_v48, %v776_v53 }
 0x1d2   : > { %v781_v56 = vmul.f32 %v780_v55, %v764_v40 }
 0x1d4   : > { %v785_v58 = vmul.f32 %v2237_v54, %v781_v56 }
 0x1d6   : > { %v789_v59 = vadd.f32 %v2238_v57, %v785_v58 }
 0x1d8   : > { %v790_v60 = vpack.c.bf16 %v789_v59, %v789_v59 }
 0x1da   : > { %1976 = vmatmul.msk.bf16.vlgmr.msra.gmra.mxu2 %vm811_vm8, %v790_v60 }
 0x25d   : > { %v824_v62 = vpop.f32.mrf.mxu2 }
 0x25e   : > { %v825_v63 = vadd.f32 %v2239_v61, %v824_v62 }
 0x260   : > { %v828_v0 = vmul.f32 0.35355338, %v825_v63  ;;  %v2611_v1 = vpack.c.bf16 %v825_v63, %v825_v63 }
 0x262   : > { %v2613_v2 = vpack.c.bf16 %v828_v0, %v828_v0  ;;  %832 = vrot.lane.b32.xlu1 %v2611_v1, %s2368_s19 }
 0x264   : > { %894 = vrot.lane.b32.xlu2 %v2613_v2, %s2958_s0 }
 0x265   : > { %v826_v3 = vpop.f32.mrf.mxu2 }
 0x26a   : > { %896 = vrot.lane.b32.xlu1 %v2611_v1, %s2370_s27 }
 0x2be   : > { %v895_v8 = vpop.permute.xlu2 %894 }
 0x2d4   : > { %v833_v4 = vpop.permute.xlu1 %832 }
 0x2d5   : > { %v839_v5 = vsel %vm834_vm9, %v833_v4, 0 }
 0x2d6   : > { %848 = vmatpush.bf16.xpose.msra.mxu3 %v839_v5 }
 0x2dc   : > { %v897_v6 = vpop.permute.xlu1 %896 }
 0x2dd   : > { %1977 = vmatmul.msk.bf16.vlgmr.msra.gmra.mxu3 %vm834_vm9, %v2613_v2  ;;  %v902_v7 = vsel %vm834_vm9, %v897_v6, 0 }
 0x2de   : > { %911 = vmatpush.bf16.xpose.msrb.mxu3 %v902_v7 }
 0x2ed   : > { %1979 = vmatmul.msk.bf16.vlgmr.msrb.gmra.mxu3 %vm834_vm9, %v895_v8 }
 0x360   : > { %v850_v9 = vpop.f32.mrf.mxu3 }
 0x361   : > { %v855_v10 = vsel %vm854_vm10, %v850_v9, -inf }
 0x362   : > { %856 = vmax.xlane.f32.xlu2 %v855_v10 }
 0x368   : > { %v852_v11 = vpop.f32.mrf.mxu3 }
 0x370   : > { %v913_v12 = vpop.f32.mrf.mxu3 }
 0x371   : > { %v917_v13 = vsel %vm854_vm10, %v913_v12, -inf }
 0x372   : > { %918 = vmax.xlane.f32.xlu0 %v917_v13 }
 0x378   : > { %v915_v14 = vpop.f32.mrf.mxu3 }
 0x37a   : > { %929 = vrot.lane.b32.xlu2 %v2611_v1, %s2952_s28  ;;  %s2988_s28 = smov 48  }
 0x382   : > { %950 = vrot.lane.b32.xlu2 %v2613_v2, %s2955_s22  ;;  %s2983_s22 = smov 80  }
 0x386   : > { %867 = vrot.lane.b32.xlu0 %v2611_v1, %s2951_s23  ;;  %s2989_s23 = smov 8  }
 0x38a   : > { %1008 = vrot.lane.b32.xlu2 %v2611_v1, %s2374_s25 }
 0x3d5   : > { %v857_v15 = vpop.xlane.xlu2 %856 }
 0x3d6   : > { %v858_v16 = vsub.f32 %v850_v9, %v857_v15 }
 0x3d8   : > { %v859_v17 = vmul.f32 1.442695, %v858_v16  ;;  %v2156_v16 = vld [vmem:[%s2927_s9 + $0x8] sm:$0xff] }
 0x3da   : > { %2257 = vpow2.f32 %v859_v17 }
 0x3dd   : > { %v930_v18 = vpop.permute.xlu2 %929 }
 0x3de   : > { %v935_v35 = vand.u32 %v930_v18, %v2639_v32 }
 0x3e0   : > { %v2258_v19 = vpop.eup %2257 }
 0x3e1   : > { %v861_v20 = vsel %vm854_vm10, %v2258_v19, 0.0 }
 0x3e2   : > { %862 = vadd.xlane.f32.xlu1 %v861_v20 }
 0x3e5   : > { %v951_v21 = vpop.permute.xlu2 %950  ;;  %v919_v22 = vpop.xlane.xlu0 %918 }
 0x3e6   : > { %v920_v23 = vsub.f32 %v913_v12, %v919_v22 }
 0x3e8   : > { %v921_v24 = vmul.f32 1.442695, %v920_v23 }
 0x3ea   : > { %2259 = vpow2.f32 %v921_v24 }
 0x3ed   : > { %v1009_v25 = vpop.permute.xlu2 %1008 }
 0x3ee   : > { %v1014_v26 = vsel %vm834_vm9, %v1009_v25, 0 }
 0x3ef   : > { %1023 = vmatpush.bf16.xpose.msrb.mxu0 %v1014_v26 }
 0x3f0   : > { %v2260_v27 = vpop.eup %2259 }
 0x3f1   : > { %v923_v28 = vsel %vm854_vm10, %v2260_v27, 0.0 }
 0x3f2   : > { %924 = vadd.xlane.f32.xlu0 %v923_v28 }
 0x3f8   : > { %v868_v33 = vpop.permute.xlu0 %867 }
 0x3f9   : > { %v878_v34 = vand.u32 %v2639_v32, %v868_v33 }
 0x3fb   : > { %952 = vrot.lane.b32.xlu1 %v2611_v1, %s2956_s2  ;;  %887 = vmatpush.bf16.msrb.mxu2 %v878_v34  ;;  %s2984_s2 = smov 112  }
 0x3ff   : > { %944 = vmatpush.bf16.msra.mxu2 %v935_v35 }
 0x403   : > { %1006 = vrot.lane.b32.xlu1 %v2613_v2, %s2957_s26  ;;  %s2991_s26 = smov 16  }
 0x455   : > { %v863_v36 = vpop.xlane.xlu1 %862 }
 0x456   : > { %2261 = vrcp.f32 %v863_v36 }
 0x45c   : > { %v2262_v38 = vpop.eup %2261 }
 0x45d   : > { %v865_v39 = vmul.f32 %v2262_v38, %v2258_v19 }
 0x45f   : > { %v866_v40 = vpack.c.bf16 %v865_v39, %v865_v39 }
 0x461   : > { %1978 = vmatmul.msk.bf16.vlgmr.msrb.gmra.mxu2 %vm869_vm13, %v866_v40 }
 0x465   : > { %v925_v41 = vpop.xlane.xlu0 %924 }
 0x466   : > { %2263 = vrcp.f32 %v925_v41 }
 0x46c   : > { %v2264_v42 = vpop.eup %2263 }
 0x46d   : > { %v927_v43 = vmul.f32 %v2264_v42, %v2260_v27  ;;  %v953_v44 = vpop.permute.xlu1 %952 }
 0x46e   : > { %v958_v45 = vsel %vm834_vm9, %v953_v44, 0  ;;  %v2166_v44 = vld [vmem:[%s2933_s15 + $0x38] sm:$0xff] }
 0x46f   : > { %v928_v46 = vpack.c.bf16 %v927_v43, %v927_v43  ;;  %967 = vmatpush.bf16.xpose.msrb.mxu2 %v958_v45  ;;  %v2157_v43 = vld [vmem:[%s2931_s13] sm:$0xff]  ;;  %1265 = vmatpush.bf16.msra.mxu0 %v2166_v44 }
 0x471   : > { %1980 = vmatmul.msk.bf16.vlgmr.msra.gmra.mxu2 %vm869_vm13, %v928_v46 }
 0x475   : > { %v1007_v47 = vpop.permute.xlu1 %1006 }
 0x476   : > { %1983 = vmatmul.msk.bf16.vlgmr.msrb.gmra.mxu0 %vm834_vm9, %v1007_v47  ;;  %v2165_v47 = vld [vmem:[%s2933_s15 + $0x30] sm:$0xff] }
 0x477   : > { %1105 = vmatpush.bf16.msra.mxu2 %v2156_v16  ;;  %1266 = vmatpush.bf16.msra.mxu0 %v2165_v47 }
 0x481   : > { %1981 = vmatmul.msk.bf16.vlgmr.msrb.gmra.mxu2 %vm834_vm9, %v951_v21  ;;  %v2155_v21 = vld [vmem:[%s2927_s9] sm:$0xff] }
 0x482   : > { %1106 = vmatpush.bf16.msra.mxu2 %v2155_v21 }
 0x4e4   : > { %v2652_v48 = vpop.f32.mrf.mxu2 }
 0x4ec   : > { %v891_v49 = vpop.f32.mrf.mxu2 }
 0x4f3   : > { %v1025_v50 = vpop.f32.mrf.mxu0 }
 0x4f4   : > { %v946_v51 = vpop.f32.mrf.mxu2  ;;  %v1029_v52 = vsel %vm854_vm10, %v1025_v50, -inf }
 0x4f5   : > { %1030 = vmax.xlane.f32.xlu2 %v1029_v52 }
 0x4fb   : > { %v1027_v53 = vpop.f32.mrf.mxu0 }
 0x4fc   : > { %v948_v54 = vpop.f32.mrf.mxu2 }
 0x504   : > { %v969_v55 = vpop.f32.mrf.mxu2 }
 0x505   : > { %v973_v56 = vsel %vm854_vm10, %v969_v55, -inf }
 0x506   : > { %974 = vmax.xlane.f32.xlu0 %v973_v56 }
 0x50c   : > { %v971_v57 = vpop.f32.mrf.mxu2 }
 0x50d   : > { %1041 = vrot.lane.b32.xlu2 %v2611_v1, %s2950_s24  ;;  %s2953_s24 = smov 16  }
 0x51a   : > { %985 = vrot.lane.b32.xlu0 %v2611_v1, %s2948_s20  ;;  %s2990_s20 = smov 24  }
 0x568   : > { %v1031_v58 = vpop.xlane.xlu2 %1030 }
 0x569   : > { %v1032_v59 = vsub.f32 %v1025_v50, %v1031_v58  ;;  %v2242_v58 = vld [vmem:[%s2930_s12] ss:$0 sm:$0xff] }
 0x56b   : > { %v1033_v60 = vmul.f32 1.442695, %v1032_v59 }
 0x56d   : > { %2265 = vpow2.f32 %v1033_v60 }
 0x570   : > { %v1042_v61 = vpop.permute.xlu2 %1041 }
 0x571   : > { %v1047_v62 = vand.u32 %v1042_v61, %v2639_v32 }
 0x573   : > { %v2266_v63 = vpop.eup %2265  ;;  %1056 = vmatpush.bf16.msrb.mxu1 %v1047_v62  ;;  %v2164_v62 = vld [vmem:[%s2933_s15 + $0x28] sm:$0xff] }
 0x574   : > { %v1035_v0 = vsel %vm854_vm10, %v2266_v63, 0.0  ;;  %1267 = vmatpush.bf16.msra.mxu0 %v2164_v62 }
 0x575   : > { %1036 = vadd.xlane.f32.xlu0 %v1035_v0  ;;  %v2162_v0 = vld [vmem:[%s2933_s15 + $0x18] sm:$0xff] }
 0x579   : > { %v975_v2 = vpop.xlane.xlu0 %974 }
 0x57a   : > { %v976_v3 = vsub.f32 %v969_v55, %v975_v2  ;;  %v2241_v55 = vld [vmem:[%s2929_s11] ss:$0 sm:$0xff]  ;;  %v2161_v2 = vld [vmem:[%s2933_s15 + $0x10] sm:$0xff] }
 0x57c   : > { %v977_v4 = vmul.f32 1.442695, %v976_v3  ;;  %v2160_v3 = vld [vmem:[%s2933_s15 + $0x8] sm:$0xff] }
 0x57e   : > { %2267 = vpow2.f32 %v977_v4  ;;  %v2159_v4 = vld [vmem:[%s2933_s15] sm:$0xff] }
 0x584   : > { %v2268_v5 = vpop.eup %2267 }
 0x585   : > { %v979_v6 = vsel %vm854_vm10, %v2268_v5, 0.0 }
 0x586   : > { %980 = vadd.xlane.f32.xlu1 %v979_v6 }
 0x58c   : > { %v986_v1 = vpop.permute.xlu0 %985 }
 0x58d   : > { %v991_v7 = vand.u32 %v986_v1, %v2639_v32 }
 0x58f   : > { %1000 = vmatpush.bf16.msra.mxu3 %v991_v7 }
 0x59f   : > { %1063 = vrot.lane.b32.xlu1 %v946_v51, %s2949_s21  ;;  %s2954_s21 = smov 24  }
 0x5e8   : > { %v1037_v8 = vpop.xlane.xlu0 %1036 }
 0x5e9   : > { %2269 = vrcp.f32 %v1037_v8 }
 0x5ef   : > { %v2270_v9 = vpop.eup %2269 }
 0x5f0   : > { %v1039_v10 = vmul.f32 %v2270_v9, %v2266_v63  ;;  %v2163_v63 = vld [vmem:[%s2933_s15 + $0x20] sm:$0xff] }
 0x5f1   : > { %1268 = vmatpush.bf16.msra.mxu0 %v2163_v63 }
 0x5f2   : > { %v1040_v11 = vpack.c.bf16 %v1039_v10, %v1039_v10 }
 0x5f4   : > { %1984 = vmatmul.msk.bf16.vlgmr.msrb.gmra.mxu1 %vm869_vm13, %v1040_v11 }
 0x5f5   : > { %1269 = vmatpush.bf16.msra.mxu0 %v2162_v0 }
 0x5f9   : > { %v981_v12 = vpop.xlane.xlu1 %980  ;;  %1270 = vmatpush.bf16.msra.mxu0 %v2161_v2 }
 0x5fa   : > { %2271 = vrcp.f32 %v981_v12 }
 0x5fd   : > { %1271 = vmatpush.bf16.msra.mxu0 %v2160_v3 }
 0x600   : > { %v2272_v13 = vpop.eup %2271 }
 0x601   : > { %v983_v14 = vmul.f32 %v2272_v13, %v2268_v5  ;;  %1272 = vmatpush.bf16.msra.mxu0 %v2159_v4  ;;  %v2243_v5 = vld [vmem:[%s2932_s14] ss:$0 sm:$0xff] }
 0x603   : > { %v984_v15 = vpack.c.bf16 %v983_v14, %v983_v14 }
 0x605   : > { %1982 = vmatmul.msk.bf16.vlgmr.msra.gmra.mxu3 %vm869_vm13, %v984_v15 }
 0x611   : > { %v1064_v22 = vpop.permute.xlu1 %1063 }
 0x612   : > { %v1074_v23 = vsel %vm834_vm9, %v2652_v48, %v1064_v22 }
 0x671   : > { %v1058_v17 = vpop.f32.mrf.mxu1 }
 0x672   : > { %1071 = vrot.lane.b32.xlu0 %v1058_v17, %s2954_s21  ;;  %s2982_s21 = smov 104  }
 0x679   : > { %v1060_v18 = vpop.f32.mrf.mxu1 }
 0x67a   : > { %v2244_v18 = vld [vmem:[%s2934_s16] ss:$0 sm:$0xff] }
 0x688   : > { %v1002_v19 = vpop.f32.mrf.mxu3 }
 0x689   : > { %1067 = vrot.lane.b32.xlu2 %v1002_v19, %s2953_s24  ;;  %s2981_s24 = smov 120  }
 0x690   : > { %v1004_v20 = vpop.f32.mrf.mxu3 }
 0x6e3   : > { %v1068_v24 = vpop.permute.xlu2 %1067 }
 0x6e4   : > { %v1076_v25 = vsel %vm1075_vm14, %v1074_v23, %v1068_v24  ;;  %v1072_v26 = vpop.permute.xlu0 %1071 }
 0x6e5   : > { %v1078_v27 = vsel %vm1077_vm15, %v1076_v25, %v1072_v26 }
 0x6e6   : > { %v1079_v28 = vpack.c.bf16 %v1078_v27, %v1078_v27 }
 0x6e8   : > { %1993 = vmatmul.msk.bf16.vlgmr.msra.gmra.mxu2 %vm811_vm8, %v1079_v28 }
 0x76b   : > { %v1108_v31 = vpop.f32.mrf.mxu2 }
 0x76c   : > { %v1112_v33 = vadd.f32 %v1108_v31, %v2585_v29  ;;  %v2158_v29 = vld [vmem:[%s2931_s13 + $0x8] sm:$0xff]  ;;  %v2167_v31 = vld [vmem:[%s2925_s7 + $0x10] sm:$0xff] }
 0x76d   : > { %1180 = vmatpush.bf16.msrb.mxu3 %v2158_v29  ;;  %v2245_v29 = vld [vmem:[%s2980_s5 + $0x1] ss:$0 sm:$0xff] }
 0x76e   : > { %v2684_v34 = vadd.f32 %v2240_v30, %v1112_v33  ;;  %v2168_v30 = vld [vmem:[%s2925_s7 + $0x18] sm:$0xff] }
 0x76f   : > { %1345 = vmatpush.bf16.msra.mxu1 %v2168_v30 }
 0x770   : > { %v1120_v35 = vsel %vm752_vm3, %v2684_v34, 0.0 }
 0x771   : > { %1121 = vadd.xlane.f32.xlu1 %v1120_v35  ;;  %1181 = vmatpush.bf16.msrb.mxu3 %v2157_v43 }
 0x773   : > { %v1110_v36 = vpop.f32.mrf.mxu2  ;;  %1346 = vmatpush.bf16.msra.mxu1 %v2167_v31 }
 0x7e4   : > { %v1122_v38 = vpop.xlane.xlu1 %1121 }
 0x7e5   : > { %v1123_v39 = vmul.f32 %v1122_v38, %v2589_v37 }
 0x7e7   : > { %v1124_v40 = vsub.f32 %v2684_v34, %v1123_v39 }
 0x7e9   : > { %v1125_v41 = vmul.f32 %v1124_v40, %v1124_v40 }
 0x7eb   : > { %v1126_v42 = vsel %vm752_vm3, %v1125_v41, 0.0 }
 0x7ec   : > { %1127 = vadd.xlane.f32.xlu2 %v1126_v42 }
 0x85f   : > { %v1128_v45 = vpop.xlane.xlu2 %1127 }
 0x860   : > { %v1129_v46 = vmul.f32 %v1128_v45, %v2589_v37  ;;  %v2246_v45 = vld [vmem:[%s2924_s6 + $0x1] ss:$0 sm:$0xff] }
 0x862   : > { %v1130_v48 = vadd.f32 1e-06, %v1129_v46 }
 0x864   : > { %2273 = vrsqrt.f32 %v1130_v48  ;;  %vm1137_vm2 = vweird.f32 %v1130_v48 }
 0x86a   : > { %v2274_v49 = vpop.eup %2273 }
 0x86b   : > { %v1132_v50 = vmul.f32 %v2274_v49, %v1130_v48  ;;  %vm1138_vm0 = vweird.f32 %v2274_v49 }
 0x86c   : > { %vm1139_vm4 = vmor %vm1137_vm2, %vm1138_vm0 }
 0x86d   : > { %v1133_v51 = vmul.f32 %v2274_v49, %v1132_v50 }
 0x86f   : > { %v1134_v52 = vmul.f32 0.5, %v1133_v51 }
 0x871   : > { %v1135_v53 = vsub.f32 1.5, %v1134_v52 }
 0x873   : > { %v1136_v54 = vmul.f32 %v2274_v49, %v1135_v53 }
 0x875   : > { %v1140_v56 = vsel %vm1139_vm4, %v2274_v49, %v1136_v54  ;;  %v2247_v49 = vld [vmem:[%s2926_s8 + $0x1] ss:$0 sm:$0xff] }
 0x876   : > { %v1141_v57 = vmul.f32 %v1140_v56, %v1124_v40 }
 0x878   : > { %v1145_v59 = vmul.f32 %v2241_v55, %v1141_v57 }
 0x87a   : > { %v1149_v60 = vadd.f32 %v2242_v58, %v1145_v59 }
 0x87c   : > { %v1150_v61 = vpack.c.bf16 %v1149_v60, %v1149_v60 }
 0x87e   : > { %2002 = vmatmul.msk.bf16.vlgmr.msrb.gmra.mxu3 %vm811_vm8, %v1150_v61 }
 0x901   : > { %v1183_v6 = vpop.f32.mrf.mxu3 }
 0x902   : > { %v1184_v1 = vadd.f32 %v2243_v5, %v1183_v6 }
 0x904   : > { %v1188_v7 = vmul.f32 0.044715, %v1184_v1  ;;  %v1187_v14 = vmul.f32 0.5, %v1184_v1 }
 0x906   : > { %v1189_v8 = vmul.f32 %v1188_v7, %v1184_v1 }
 0x908   : > { %v1190_v9 = vmul.f32 %v1189_v8, %v1184_v1 }
 0x909   : > { %v1185_v10 = vpop.f32.mrf.mxu3 }
 0x90a   : > { %v1191_v11 = vadd.f32 %v1190_v9, %v1184_v1 }
 0x90c   : > { %v1192_v12 = vmul.f32 0.7978846, %v1191_v11 }
 0x90e   : > { %2275 = vtanh.f32 %v1192_v12 }
 0x914   : > { %v2276_v13 = vpop.eup %2275 }
 0x915   : > { %v1194_v15 = vadd.f32 1.0, %v2276_v13 }
 0x917   : > { %v1195_v16 = vmul.f32 %v1194_v15, %v1187_v14 }
 0x919   : > { %v1196_v17 = vpack.c.bf16 %v1195_v16, %v1195_v16 }
 0x91b   : > { %1273 = vmatmul.bf16.vlgmr.msra.gmra.mxu0 %v1196_v17 }
 0x998   : > { %v1274_v19 = vpop.f32.mrf.mxu0 }
 0x999   : > { %v1275_v20 = vadd.f32 %v2244_v18, %v1274_v19 }
 0x99b   : > { %v2736_v21 = vadd.f32 %v1275_v20, %v2684_v34 }
 0x99d   : > { %v1283_v22 = vsel %vm752_vm3, %v2736_v21, 0.0 }
 0x99e   : > { %1284 = vadd.xlane.f32.xlu0 %v1283_v22 }
 0x9a0   : > { %v1276_v23 = vpop.f32.mrf.mxu0 }
 0xa11   : > { %v1285_v24 = vpop.xlane.xlu0 %1284 }
 0xa12   : > { %v1286_v25 = vmul.f32 %v1285_v24, %v2589_v37 }
 0xa14   : > { %v1287_v26 = vsub.f32 %v2736_v21, %v1286_v25 }
 0xa16   : > { %v1288_v27 = vmul.f32 %v1287_v26, %v1287_v26 }
 0xa18   : > { %v1289_v28 = vsel %vm752_vm3, %v1288_v27, 0.0 }
 0xa19   : > { %1290 = vadd.xlane.f32.xlu1 %v1289_v28 }
 0xa8c   : > { %v1291_v33 = vpop.xlane.xlu1 %1290 }
 0xa8d   : > { %v1292_v34 = vmul.f32 %v1291_v33, %v2589_v37 }
 0xa8f   : > { %v1293_v35 = vadd.f32 1e-06, %v1292_v34 }
 0xa91   : > { %2277 = vrsqrt.f32 %v1293_v35  ;;  %vm1300_vm6 = vweird.f32 %v1293_v35 }
 0xa97   : > { %v2278_v36 = vpop.eup %2277 }
 0xa98   : > { %v1295_v38 = vmul.f32 %v2278_v36, %v1293_v35  ;;  %vm1301_vm5 = vweird.f32 %v2278_v36 }
 0xa99   : > { %vm1302_vm7 = vmor %vm1300_vm6, %vm1301_vm5 }
 0xa9a   : > { %v1296_v39 = vmul.f32 %v2278_v36, %v1295_v38 }
 0xa9c   : > { %v1297_v40 = vmul.f32 0.5, %v1296_v39 }
 0xa9e   : > { %v1298_v41 = vsub.f32 1.5, %v1297_v40 }
 0xaa0   : > { %v1299_v42 = vmul.f32 %v2278_v36, %v1298_v41 }
 0xaa2   : > { %v1303_v43 = vsel %vm1302_vm7, %v2278_v36, %v1299_v42 }
 0xaa3   : > { %v1304_v44 = vmul.f32 %v1303_v43, %v1287_v26 }
 0xaa5   : > { %v1308_v46 = vmul.f32 %v2245_v29, %v1304_v44 }
 0xaa7   : > { %v1312_v47 = vadd.f32 %v2246_v45, %v1308_v46 }
 0xaa9   : > { %v1313_v48 = vpack.c.bf16 %v1312_v47, %v1312_v47 }
 0xaab   : > { %2050 = vmatmul.msk.bf16.vlgmr.msra.gmra.mxu1 %vm811_vm8, %v1313_v48 }
 0xb28   : > { %v1348_v50 = vpop.f32.mrf.mxu1 }
 0xb29   : > { %v1349_v51 = vadd.f32 %v2247_v49, %v1348_v50 }
 0xb2b   : > { %v2760_v52 = vpack.c.bf16 %v1349_v51, %v1349_v51  ;;  %v1352_v53 = vmul.f32 0.35355338, %v1349_v51 }
 0xb2d   : > { %1413 = vrot.lane.b32.xlu0 %v2760_v52, %s2370_s27  ;;  %1356 = vrot.lane.b32.xlu2 %v2760_v52, %s2368_s19  ;;  %v1353_v55 = vpack.c.bf16 %v1352_v53, %v1352_v53  ;;  %s2985_s19 = smov 56   ;;  %s2986_s27 = smov 64  }
 0xb30   : > { %v1350_v54 = vpop.f32.mrf.mxu1 }
 0xb35   : > { %1525 = vrot.lane.b32.xlu0 %v2760_v52, %s2374_s25  ;;  %1411 = vrot.lane.b32.xlu2 %v1353_v55, %s2981_s24  ;;  %s2987_s25 = smov 40   ;;  %s2992_s24 = sld [smem:[#allocation19_spill]] }
 0xb3b   : > { %s2323_s0 = scalar_lea.hbm %s2992_s24, 2 }
 0xb3d   : > { %1523 = vrot.lane.b32.xlu0 %v1353_v55, %s2982_s21  ;;  %1469 = vrot.lane.b32.xlu2 %v2760_v52, %s2983_s22  ;;  %s1854_s21 = scalar_lea.hbm %s2992_s24, %s2504_s1 }
 0xb45   : > { %1467 = vrot.lane.b32.xlu2 %v1353_v55, %s2984_s2  ;;  %s594_s2 = scalar_lea.vmem [#allocation3], %s593_s3 }
 0xb87   : > { %v1357_v56 = vpop.permute.xlu2 %1356 }
 0xb88   : > { %v1362_v57 = vsel %vm834_vm9, %v1357_v56, 0 }
 0xb89   : > { %1371 = vmatpush.bf16.xpose.msrb.mxu2 %v1362_v57 }
 0xb8f   : > { %v1412_v60 = vpop.permute.xlu2 %1411 }
 0xb90   : > { %2051 = vmatmul.msk.bf16.vlgmr.msrb.gmra.mxu2 %vm834_vm9, %v1353_v55 }
 0xb97   : > { %v1470_v13 = vpop.permute.xlu2 %1469 }
 0xb98   : > { %v1475_v25 = vsel %vm834_vm9, %v1470_v13, 0 }
 0xb9f   : > { %v1414_v58 = vpop.permute.xlu0 %1413  ;;  %v1468_v14 = vpop.permute.xlu2 %1467 }
 0xba0   : > { %v1419_v59 = vsel %vm834_vm9, %v1414_v58, 0 }
 0xba1   : > { %1428 = vmatpush.bf16.xpose.msrb.mxu1 %v1419_v59 }
 0xba7   : > { %v1526_v61 = vpop.permute.xlu0 %1525 }
 0xba8   : > { %v1531_v62 = vsel %vm834_vm9, %v1526_v61, 0  ;;  %2053 = vmatmul.msk.bf16.vlgmr.msrb.gmra.mxu1 %vm834_vm9, %v1412_v60 }
 0xba9   : > { %1540 = vmatpush.bf16.xpose.msra.mxu1 %v1531_v62 }
 0xbaf   : > { %v1524_v63 = vpop.permute.xlu0 %1523 }
 0xbb8   : > { %2057 = vmatmul.msk.bf16.vlgmr.msra.gmra.mxu1 %vm834_vm9, %v1524_v63 }
 0xc13   : > { %v1373_v0 = vpop.f32.mrf.mxu2 }
 0xc14   : > { %v1377_v2 = vsel %vm854_vm10, %v1373_v0, -inf }
 0xc15   : > { %1378 = vmax.xlane.f32.xlu1 %v1377_v2 }
 0xc1b   : > { %v1375_v3 = vpop.f32.mrf.mxu2 }
 0xc25   : > { %v1430_v4 = vpop.f32.mrf.mxu1 }
 0xc26   : > { %v1434_v18 = vsel %vm854_vm10, %v1430_v4, -inf }
 0xc2d   : > { %v1432_v5 = vpop.f32.mrf.mxu1 }
 0xc35   : > { %v1542_v6 = vpop.f32.mrf.mxu1 }
 0xc36   : > { %v1546_v1 = vsel %vm854_vm10, %v1542_v6, -inf }
 0xc37   : > { %1547 = vmax.xlane.f32.xlu2 %v1546_v1 }
 0xc3d   : > { %v1544_v7 = vpop.f32.mrf.mxu1 }
 0xc4f   : > { %1446 = vrot.lane.b32.xlu2 %v2760_v52, %s2985_s19  ;;  %s1856_s19 = sshll.u32 %s594_s2, 4  ;;  %s1857_s19 = int_to_ptr.vmem [resolvable:$true] %s1856_s19 }
 0xc88   : > { %v1379_v8 = vpop.xlane.xlu1 %1378 }
 0xc89   : > { %v1380_v9 = vsub.f32 %v1373_v0, %v1379_v8 }
 0xc8b   : > { %v1381_v10 = vmul.f32 1.442695, %v1380_v9 }
 0xc8d   : > { %2279 = vpow2.f32 %v1381_v10 }
 0xc93   : > { %v2280_v11 = vpop.eup %2279 }
 0xc94   : > { %v1383_v12 = vsel %vm854_vm10, %v2280_v11, 0.0 }
 0xc95   : > { %1384 = vadd.xlane.f32.xlu1 %v1383_v12 }
 0xcaa   : > { %v1548_v15 = vpop.xlane.xlu2 %1547 }
 0xcab   : > { %v1549_v35 = vsub.f32 %v1542_v6, %v1548_v15 }
 0xcad   : > { %v1550_v38 = vmul.f32 1.442695, %v1549_v35 }
 0xcae   : > { %1389 = vrot.lane.b32.xlu1 %v2760_v52, %s2986_s27  ;;  %s1858_s27 = sshll.u32 %s1854_s21, 4  ;;  %s1859_s27 = int_to_ptr.hbm [resolvable:$true] %s1858_s27 }
 0xcb2   : > { %v1447_v16 = vpop.permute.xlu2 %1446 }
 0xcb3   : > { %v1452_v17 = vand.u32 %v1447_v16, %v2639_v32 }
 0xcb5   : > { %1461 = vmatpush.bf16.msra.mxu2 %v1452_v17 }
 0xcd8   : > { %1435 = vmax.xlane.f32.xlu1 %v1434_v18 }
 0xd08   : > { %v1385_v19 = vpop.xlane.xlu1 %1384 }
 0xd09   : > { %2281 = vrcp.f32 %v1385_v19 }
 0xd0f   : > { %v2282_v20 = vpop.eup %2281 }
 0xd10   : > { %v1387_v22 = vmul.f32 %v2282_v20, %v2280_v11 }
 0xd12   : > { %v1388_v26 = vpack.c.bf16 %v1387_v22, %v1387_v22 }
 0xd20   : > { %v1390_v23 = vpop.permute.xlu1 %1389 }
 0xd21   : > { %v1395_v24 = vand.u32 %v1390_v23, %v2639_v32 }
 0xd23   : > { %1404 = vmatpush.bf16.msra.mxu3 %v1395_v24 }
 0xd26   : > { %2052 = vmatmul.msk.bf16.vlgmr.msra.gmra.mxu3 %vm869_vm13, %v1388_v26  ;;  %v2171_v26 = vld [vmem:[%s2931_s13 + $0x10] sm:$0xff] }
 0xd27   : > { %1484 = vmatpush.bf16.xpose.msrb.mxu3 %v1475_v25 }
 0xd36   : > { %2055 = vmatmul.msk.bf16.vlgmr.msrb.gmra.mxu3 %vm834_vm9, %v1468_v14  ;;  %v2248_v14 = vld [vmem:[%s2928_s10 + $0x1] ss:$0 sm:$0xff] }
 0xd4b   : > { %v1436_v27 = vpop.xlane.xlu1 %1435 }
 0xd4c   : > { %v1437_v28 = vsub.f32 %v1430_v4, %v1436_v27  ;;  %v2180_v27 = vld [vmem:[%s2933_s15 + $0x78] sm:$0xff] }
 0xd4d   : > { %1788 = vmatpush.bf16.msrb.mxu1 %v2180_v27 }
 0xd4e   : > { %v1438_v30 = vmul.f32 1.442695, %v1437_v28 }
 0xd50   : > { %2283 = vpow2.f32 %v1438_v30 }
 0xd51   : > { %2285 = vpow2.f32 %v1550_v38 }
 0xd56   : > { %v2284_v31 = vpop.eup %2283 }
 0xd57   : > { %v1440_v33 = vsel %vm854_vm10, %v2284_v31, 0.0  ;;  %v2286_v41 = vpop.eup %2285 }
 0xd58   : > { %1441 = vadd.xlane.f32.xlu1 %v1440_v33  ;;  %v1552_v29 = vsel %vm854_vm10, %v2286_v41, 0.0 }
 0xda9   : > { %v1406_v34 = vpop.f32.mrf.mxu3 }
 0xdb1   : > { %v1408_v36 = vpop.f32.mrf.mxu3 }
 0xdb9   : > { %v1486_v39 = vpop.f32.mrf.mxu3 }
 0xdba   : > { %v1490_v40 = vsel %vm854_vm10, %v1486_v39, -inf }
 0xdbb   : > { %1491 = vmax.xlane.f32.xlu0 %v1490_v40 }
 0xdc1   : > { %v1488_v42 = vpop.f32.mrf.mxu3 }
 0xdc3   : > { %1553 = vadd.xlane.f32.xlu0 %v1552_v29 }
 0xdcb   : > { %v1442_v43 = vpop.xlane.xlu1 %1441 }
 0xdcc   : > { %2287 = vrcp.f32 %v1442_v43  ;;  %v2250_v43 = vld [vmem:[%s2930_s12 + $0x1] ss:$0 sm:$0xff] }
 0xdd2   : > { %v2288_v44 = vpop.eup %2287 }
 0xdd3   : > { %v1444_v45 = vmul.f32 %v2288_v44, %v2284_v31  ;;  %v2179_v31 = vld [vmem:[%s2933_s15 + $0x70] sm:$0xff] }
 0xdd4   : > { %1789 = vmatpush.bf16.msrb.mxu1 %v2179_v31 }
 0xdd5   : > { %v1445_v46 = vpack.c.bf16 %v1444_v45, %v1444_v45 }
 0xdd7   : > { %1558 = vrot.lane.b32.xlu0 %v2760_v52, %s2987_s25  ;;  %2054 = vmatmul.msk.bf16.vlgmr.msra.gmra.mxu2 %vm869_vm13, %v1445_v46  ;;  %s1846_s25 = scalar_lea.sflag [#allocation4], %s593_s3 }
 0xe2e   : > { %v1492_v47 = vpop.xlane.xlu0 %1491 }
 0xe2f   : > { %v1493_v48 = vsub.f32 %v1486_v39, %v1492_v47  ;;  %v2178_v47 = vld [vmem:[%s2933_s15 + $0x68] sm:$0xff] }
 0xe30   : > { %1790 = vmatpush.bf16.msrb.mxu1 %v2178_v47 }
 0xe31   : > { %v1494_v49 = vmul.f32 1.442695, %v1493_v48  ;;  %v2177_v48 = vld [vmem:[%s2933_s15 + $0x60] sm:$0xff] }
 0xe33   : > { %2289 = vpow2.f32 %v1494_v49  ;;  %v2176_v49 = vld [vmem:[%s2933_s15 + $0x58] sm:$0xff] }
 0xe34   : > { %1791 = vmatpush.bf16.msrb.mxu1 %v2177_v48 }
 0xe36   : > { %v1554_v53 = vpop.xlane.xlu0 %1553 }
 0xe37   : > { %2291 = vrcp.f32 %v1554_v53  ;;  %v2173_v53 = vld [vmem:[%s2933_s15 + $0x40] sm:$0xff] }
 0xe38   : > { %1792 = vmatpush.bf16.msrb.mxu1 %v2176_v49 }
 0xe39   : > { %v2290_v50 = vpop.eup %2289 }
 0xe3a   : > { %v1496_v51 = vsel %vm854_vm10, %v2290_v50, 0.0 }
 0xe3b   : > { %1497 = vadd.xlane.f32.xlu1 %v1496_v51  ;;  %v2174_v51 = vld [vmem:[%s2933_s15 + $0x48] sm:$0xff] }
 0xe3d   : > { %v2292_v54 = vpop.eup %2291 }
 0xe3e   : > { %v1556_v55 = vmul.f32 %v2292_v54, %v2286_v41  ;;  %v2249_v41 = vld [vmem:[%s2929_s11 + $0x1] ss:$0 sm:$0xff] }
 0xe3f   : > { %v2251_v54 = vld [vmem:[%s2932_s14 + $0x1] ss:$0 sm:$0xff] }
 0xe40   : > { %v1557_v58 = vpack.c.bf16 %v1556_v55, %v1556_v55 }
 0xe49   : > { %v1559_v56 = vpop.permute.xlu0 %1558 }
 0xe4a   : > { %v1564_v57 = vand.u32 %v1559_v56, %v2639_v32 }
 0xe4c   : > { %1573 = vmatpush.bf16.msrb.mxu2 %v1564_v57 }
 0xe4f   : > { %2058 = vmatmul.msk.bf16.vlgmr.msrb.gmra.mxu2 %vm869_vm13, %v1557_v58 }
 0xe54   : > { %1502 = vrot.lane.b32.xlu1 %v2760_v52, %s2988_s28  ;;  %v2170_v52 = vld [vmem:[%s2927_s9 + $0x18] sm:$0xff]  ;;  %s2317_s28 = sshra.s32 %s1859_s27, 4  ;;  %s2318_s28 = int_to_ptr.hbm [resolvable:$true] %s2317_s28 }
 0xe55   : > { %1621 = vmatpush.bf16.msra.mxu3 %v2170_v52  ;;  %p2324_p0 = scmp.lt.s32.totalorder %s2318_s28, %s2992_s24 }
 0xe5a   : > { %v1463_v59 = vpop.f32.mrf.mxu2 }
 0xe5b   : > { %1580 = vrot.lane.b32.xlu2 %v1463_v59, %s2989_s23  ;;  %s2319_s23 = scalar_lea.hbm %s2318_s28, 1 }
 0xe5c   : > { %p2320_p11 = scmp.ne.s32.totalorder %s2318_s28, %s2319_s23  ;;  %p2325_p1 = scmp.lt.s32.totalorder %s2323_s0, %s2319_s23 }
 0xe5e   : > { %p2321_p12 = pnand %p2320_p11, %p2521_p5  ;;  %p2326_p2 = por %p2325_p1, %p2324_p0 }
 0xe60   : > { %p2322_p13 = pneg %p2321_p12 }
 0xe62   : > { %v1465_v60 = vpop.f32.mrf.mxu2  ;;  %p2327_p3 = pnand %p2326_p2, %p2322_p13 }
 0xeae   : > { %v1498_v61 = vpop.xlane.xlu1 %1497 }
 0xeaf   : > { %2293 = vrcp.f32 %v1498_v61 }
 0xeb5   : > { %v2294_v62 = vpop.eup %2293  ;;  %v1581_v7 = vpop.permute.xlu2 %1580 }
 0xeb6   : > { %v1500_v63 = vmul.f32 %v2294_v62, %v2290_v50  ;;  %v1591_v8 = vsel %vm834_vm9, %v1406_v34, %v1581_v7  ;;  %v2175_v50 = vld [vmem:[%s2933_s15 + $0x50] sm:$0xff] }
 0xeb7   : > { %1793 = vmatpush.bf16.msrb.mxu1 %v2175_v50 }
 0xeb8   : > { %v1501_v3 = vpack.c.bf16 %v1500_v63, %v1500_v63 }
 0xebb   : > { %1794 = vmatpush.bf16.msrb.mxu1 %v2174_v51 }
 0xebf   : > { %1795 = vmatpush.bf16.msrb.mxu1 %v2173_v53 }
 0xec6   : > { %v1503_v0 = vpop.permute.xlu1 %1502 }
 0xec7   : > { %v1508_v2 = vand.u32 %v1503_v0, %v2639_v32  ;;  %v2169_v32 = vld [vmem:[%s2927_s9 + $0x10] sm:$0xff] }
 0xec8   : > { %1622 = vmatpush.bf16.msra.mxu3 %v2169_v32 }
 0xec9   : > { %1517 = vmatpush.bf16.msrb.mxu0 %v1508_v2 }
 0xecc   : > { %2056 = vmatmul.msk.bf16.vlgmr.msrb.gmra.mxu0 %vm869_vm13, %v1501_v3 }
 0xed2   : > { %v1575_v4 = vpop.f32.mrf.mxu2 }
 0xed3   : > { %1588 = vrot.lane.b32.xlu2 %v1575_v4, %s2990_s20 }
 0xeda   : > { %v1577_v5 = vpop.f32.mrf.mxu2 }
 0xedb   : > { %v2252_v5 = vld [vmem:[%s2934_s16 + $0x1] ss:$0 sm:$0xff] }
 0xf2d   : > { %v1589_v10 = vpop.permute.xlu2 %1588 }
 0xf49   : > { %v1519_v6 = vpop.f32.mrf.mxu0 }
 0xf4a   : > { %1584 = vrot.lane.b32.xlu0 %v1519_v6, %s2991_s26 }
 0xf51   : > { %v1521_v1 = vpop.f32.mrf.mxu0 }
 0xfbc   : > { %v1585_v9 = vpop.permute.xlu0 %1584 }
 0xfbd   : > { %v1592_v11 = vsel %vm1075_vm14, %v1591_v8, %v1585_v9 }
 0xfbe   : > { %v1593_v12 = vsel %vm1077_vm15, %v1592_v11, %v1589_v10 }
 0xfbf   : > { %v1594_v13 = vpack.c.bf16 %v1593_v12, %v1593_v12 }
 0xfc1   : > { %2071 = vmatmul.msk.bf16.vlgmr.msra.gmra.mxu3 %vm811_vm8, %v1594_v13 }
0x1044   : > { %v1624_v15 = vpop.f32.mrf.mxu3 }
0x1045   : > { %v1628_v16 = vadd.f32 %v1624_v15, %v2736_v21  ;;  %v2172_v21 = vld [vmem:[%s2931_s13 + $0x18] sm:$0xff] }
0x1046   : > { %1701 = vmatpush.bf16.msra.mxu0 %v2172_v21 }
0x1047   : > { %v2822_v17 = vadd.f32 %v2248_v14, %v1628_v16 }
0x1049   : > { %v1639_v18 = vsel %vm752_vm3, %v2822_v17, 0.0 }
0x104a   : > { %1640 = vadd.xlane.f32.xlu0 %v1639_v18  ;;  %1702 = vmatpush.bf16.msra.mxu0 %v2171_v26 }
0x104c   : > { %v1626_v19 = vpop.f32.mrf.mxu3 }
0x10bd   : > { %v1641_v20 = vpop.xlane.xlu0 %1640 }
0x10be   : > { %v1642_v22 = vmul.f32 %v1641_v20, %v2589_v37 }
0x10c0   : > { %v1643_v23 = vsub.f32 %v2822_v17, %v1642_v22 }
0x10c2   : > { %v1644_v24 = vmul.f32 %v1643_v23, %v1643_v23 }
0x10c4   : > { %v1645_v25 = vsel %vm752_vm3, %v1644_v24, 0.0  ;;  %v1802_v24 = vld [vmem:[%s2935_s17] sm:$0x1] }
0x10c5   : > { %1646 = vadd.xlane.f32.xlu1 %v1645_v25 }
0x1138   : > { %v1647_v28 = vpop.xlane.xlu1 %1646 }
0x1139   : > { %v1648_v30 = vmul.f32 %v1647_v28, %v2589_v37 }
0x113b   : > { %v1649_v33 = vadd.f32 1e-06, %v1648_v30 }
0x113d   : > { %2295 = vrsqrt.f32 %v1649_v33  ;;  %vm1656_vm9 = vweird.f32 %v1649_v33 }
0x1143   : > { %v2296_v34 = vpop.eup %2295 }
0x1144   : > { %v1651_v35 = vmul.f32 %v2296_v34, %v1649_v33  ;;  %vm1657_vm3 = vweird.f32 %v2296_v34 }
0x1145   : > { %vm1658_vm10 = vmor %vm1656_vm9, %vm1657_vm3 }
0x1146   : > { %v1652_v36 = vmul.f32 %v2296_v34, %v1651_v35 }
0x1148   : > { %v1653_v38 = vmul.f32 0.5, %v1652_v36 }
0x114a   : > { %v1654_v39 = vsub.f32 1.5, %v1653_v38 }
0x114c   : > { %v1655_v40 = vmul.f32 %v2296_v34, %v1654_v39 }
0x114e   : > { %v1659_v42 = vsel %vm1658_vm10, %v2296_v34, %v1655_v40 }
0x114f   : > { %v1660_v29 = vmul.f32 %v1659_v42, %v1643_v23 }
0x1151   : > { %v1664_v44 = vmul.f32 %v2249_v41, %v1660_v29 }
0x1153   : > { %v1668_v45 = vadd.f32 %v2250_v43, %v1664_v44 }
0x1155   : > { %v1669_v46 = vpack.c.bf16 %v1668_v45, %v1668_v45 }
0x1157   : > { %2088 = vmatmul.msk.bf16.vlgmr.msra.gmra.mxu0 %vm811_vm8, %v1669_v46 }
0x11d4   : > { %v1704_v55 = vpop.f32.mrf.mxu0 }
0x11d5   : > { %v1705_v56 = vadd.f32 %v2251_v54, %v1704_v55 }
0x11d7   : > { %v1709_v57 = vmul.f32 0.044715, %v1705_v56  ;;  %v1708_v0 = vmul.f32 0.5, %v1705_v56 }
0x11d9   : > { %v1710_v58 = vmul.f32 %v1709_v57, %v1705_v56 }
0x11db   : > { %v1711_v59 = vmul.f32 %v1710_v58, %v1705_v56 }
0x11dc   : > { %v1706_v60 = vpop.f32.mrf.mxu0 }
0x11dd   : > { %v1712_v61 = vadd.f32 %v1711_v59, %v1705_v56 }
0x11df   : > { %v1713_v62 = vmul.f32 0.7978846, %v1712_v61 }
0x11e1   : > { %2297 = vtanh.f32 %v1713_v62 }
0x11e7   : > { %v2298_v63 = vpop.eup %2297 }
0x11e8   : > { %v1715_v2 = vadd.f32 1.0, %v2298_v63 }
0x11ea   : > { %v1716_v3 = vmul.f32 %v1715_v2, %v1708_v0 }
0x11ec   : > { %v1717_v4 = vpack.c.bf16 %v1716_v3, %v1716_v3 }
0x11ee   : > { %1796 = vmatmul.bf16.vlgmr.msrb.gmra.mxu1 %v1717_v4 }
0x126b   : > { %v1797_v52 = vpop.f32.mrf.mxu1 }
0x126c   : > { %v1798_v6 = vadd.f32 %v2252_v5, %v1797_v52 }
0x126e   : > { %v1801_v1 = vadd.f32 %v1798_v6, %v2822_v17 }
0x1270   : > { %v1804_v32 = vsel %vm743_vm1, %v1801_v1, 0.0 }
0x1271   : > { %1805 = vadd.xlane.f32.xlu2 %v1804_v32 }
0x1273   : > { %v1799_v7 = vpop.f32.mrf.mxu1 }
0x12e4   : > { %v1806_v8 = vpop.xlane.xlu2 %1805 }
0x12e5   : > { %v1807_v9 = vmul.f32 %v1806_v8, %v2589_v37 }
0x12e7   : > { %v1808_v10 = vsub.f32 %v1801_v1, %v1807_v9 }
0x12e9   : > { %v1809_v11 = vmul.f32 %v1808_v10, %v1808_v10 }
0x12eb   : > { %v1810_v12 = vsel %vm743_vm1, %v1809_v11, 0.0 }
0x12ec   : > { %1811 = vadd.xlane.f32.xlu2 %v1810_v12 }
0x135f   : > { %v1812_v13 = vpop.xlane.xlu2 %1811 }
0x1360   : > { %v1813_v14 = vmul.f32 %v1812_v13, %v2589_v37  ;;  %v1803_v37 = vld [vmem:[%s2936_s18] sm:$0x1] }
0x1362   : > { %v1814_v15 = vadd.f32 1e-06, %v1813_v14 }
0x1364   : > { %2299 = vrsqrt.f32 %v1814_v15  ;;  %vm1821_vm11 = vweird.f32 %v1814_v15 }
0x136a   : > { %v2300_v16 = vpop.eup %2299 }
0x136b   : > { %v1816_v18 = vmul.f32 %v2300_v16, %v1814_v15  ;;  %vm1822_vm8 = vweird.f32 %v2300_v16 }
0x136c   : > { %vm1823_vm12 = vmor %vm1821_vm11, %vm1822_vm8 }
0x136d   : > { %v1817_v17 = vmul.f32 %v2300_v16, %v1816_v18 }
0x136f   : > { %v1818_v19 = vmul.f32 0.5, %v1817_v17 }
0x1371   : > { %v1819_v20 = vsub.f32 1.5, %v1818_v19 }
0x1373   : > { %v1820_v22 = vmul.f32 %v2300_v16, %v1819_v20 }
0x1375   : > { %v1824_v23 = vsel %vm1823_vm12, %v2300_v16, %v1820_v22 }
0x1376   : > { %v1825_v25 = vmul.f32 %v1824_v23, %v1808_v10 }
0x1378   : > { %v1826_v21 = vmul.f32 %v1825_v25, %v1802_v24 }
0x137a   : > { %v1827_v26 = vadd.f32 %v1826_v21, %v1803_v37 }
0x137c   : > { %v1828_v27 = vmul.f32 %v1827_v26, %v1827_v26 }
0x137e   : > { %v1829_v28 = vsel %vm743_vm1, %v1828_v27, 0.0 }
0x137f   : > { %1830 = vadd.xlane.f32.xlu0 %v1829_v28 }
0x13f2   : > { %v1831_v30 = vpop.xlane.xlu0 %1830 }
0x13f3   : > { %v1832_v31 = vmax.f32 %v1831_v30, 1e-24 }
0x13f5   : > { %2301 = vrsqrt.f32 %v1832_v31  ;;  %vm1839_vm14 = vweird.f32 %v1832_v31 }
0x13fb   : > { %v2302_v33 = vpop.eup %2301 }
0x13fc   : > { %v1834_v34 = vmul.f32 %v2302_v33, %v1832_v31  ;;  %vm1840_vm13 = vweird.f32 %v2302_v33 }
0x13fd   : > { %vm1841_vm15 = vmor %vm1839_vm14, %vm1840_vm13 }
0x13fe   : > { %v1835_v35 = vmul.f32 %v2302_v33, %v1834_v34 }
0x1400   : > { %v1836_v36 = vmul.f32 0.5, %v1835_v35 }
0x1402   : > { %v1837_v38 = vsub.f32 1.5, %v1836_v36 }
0x1404   : > { %v1838_v39 = vmul.f32 %v2302_v33, %v1837_v38 }
0x1406   : > { %v1842_v40 = vsel %vm1841_vm15, %v2302_v33, %v1838_v39 }
0x1407   : > { %v1843_v41 = vmul.f32 %v1842_v40, %v1827_v26 }
0x1409   : > { %1844 = vst.msk [vmem:[%s594_s2] sm:$0x1] %vm743_vm1, %v1843_v41 }
0x140a   : > { %2330 = shalt.err (!%p2327_p3)
}
0x140b   : > { %2181 = dma.vmem_to_hbm [thread:$0]  (%p2521_p5), %s1857_s19, 16, %s1859_s27, %s1846_s25  }
0x140c PF: > { %s2994_s3 = sld [smem:[#allocation8_spill]] }
0x140d   : > { %s2995_s2 = sld [smem:[#allocation6_spill]] }
0x1412   : > { %p2187_p4 = scmp.ge.s32.totalorder %s2994_s3, 2 }
0x1413   : > { %s1870_s5 = sand.u32 1, %s2995_s2  }
0x1414   : > { %p2184_p7 = pnand %p2187_p4, %p2525_p6  ;;  %s1871_s1 = scalar_lea.sflag [#allocation4], %s1870_s5 }
0x1416   : > { %p2185_p8 = pneg %p2184_p7 }
0x1418   : > { %2348 = dma.done.wait (%p2185_p8), %s1871_s1, 16  }
0x1419   : > { %2350 = vsyncadd (%p2185_p8), %s1871_s1, 4294967280  ;;  %s2997_s21 = sld [smem:[#allocation9_spill]]  ;;  %s3000_s0 = smov %s2357_s30 }
0x141a   : > { %s2998_s28 = sld [smem:[#allocation7_spill]] }
0x141b   : > { %s2999_s20 = sld [smem:[#allocation10_spill]] }
0x141f   : > { %p29_p9 = scmp.ge.s32.totalorder %s2997_s21, 4  }
0x1420   : > { %s3001_s30 = smov %s2998_s28 }
0x1421   :  { %31 = sbr.rel (!%p29_p9) target bundleno = 11 (0xb), region = 143 }
0x1426   :  { %1876 = vsyncpa [#allocation4], 1 }
0x1427   :  { %1878 = vsyncpa [#allocation4 + $0x1], 1 }

</bundles_post_ra>
